<compile_context>
chip_gen: v5e
topology: v5e:2x2
jax: 0.10.0
libtpu: 0.0.40
codegen_flags: <defaults>
</compile_context>

<pallas_src>
import jax
import jax.numpy as jnp
from jax import lax
from jax.experimental import pallas as pl
from jax.experimental.pallas import tpu as pltpu

EPS = 1e-5
COUT = 17  # fixed by the module (out_channel=17)


def _round_up(a, m):
    return ((a + m - 1) // m) * m


def _tpu_vmem_and_cores():
    """Trace-time chip query: (VMEM capacity bytes, # TensorCores per device)."""
    vmem_cap = 64 * 1024 * 1024          # conservative default (v7x-sized)
    try:
        info = pltpu.get_tpu_info()
        cap = int(getattr(info, "vmem_capacity_bytes", 0) or 0)
        if cap >= 16 * 1024 * 1024:
            vmem_cap = cap
    except Exception:
        pass
    cores = 1
    try:
        dev = jax.devices()[0]
        n = None
        for attr in ("num_cores", "core_count"):
            v = getattr(dev, attr, None)
            if isinstance(v, int) and v > 0:
                n = v
                break
        if n is None:
            kind = (getattr(dev, "device_kind", "") or "").lower()
            # v7x (and megacore v4/v5p) have 2 TensorCores; v5e/v6e have 1.
            if ("v7" in kind) or ("v5p" in kind) or ("v4" in kind):
                n = 2
        cores = n or 1
    except Exception:
        cores = 1
    return vmem_cap, max(1, int(cores))


def _pick_tb(bn, per_img_bytes, fixed_bytes, budget_bytes, cores):
    """Images per grid step: amortize ~0.35us/step, stay in VMEM, balance cores."""
    cap = max(1, (budget_bytes - fixed_bytes) // max(per_img_bytes, 1))
    divisors = sorted((d for d in range(1, bn + 1) if bn % d == 0), reverse=True)
    passes = (True, False) if cores > 1 else (False,)
    for balanced in passes:
        for tb in divisors:
            if tb > cap:
                continue
            steps = bn // tb
            if balanced and bn >= cores and steps % cores != 0:
                continue                      # keep grid count a multiple of #cores
            return tb
    return 1


def decoder_forward(x, w_oihw, bias, gamma, beta, running_mean, running_var):
    """x: (B, N, C, H, W) float32 -> (B, N, 17, H, W) float32 (eval-mode BN)."""
    B, N, C, H, W = x.shape
    BN, HW = B * N, H * W

    # ---- fold conv bias + eval-mode BatchNorm into per-channel scale/shift ----
    inv_std = 1.0 / jnp.sqrt(running_var + EPS)
    scale = gamma * inv_std                                        # (17,)
    # OIHW (17,C,3,3) -> (17,3,3,C) -> (17, 9C): column = (kh*3+kw)*C + c
    w_mat = (w_oihw.transpose(0, 2, 3, 1).reshape(COUT, 9 * C)
             * scale[:, None]).astype(jnp.float32)
    shift = (beta + (bias - running_mean) * scale).reshape(COUT, 1).astype(jnp.float32)

    # ---- input layout: H-pad, row-flatten, 1 leading zero, lane-align --------
    # xf[b, c, 1 + i*W + w] = x_hpad[b, c, i, w]   (rows i=0 and i=H+1 are zero)
    # For tap (kh, kw): conv input Xp[c, h+kh, w+kw] == xf[c, (h*W+w) + kh*W + kw]
    # except at w==0 (kw==0) / w==W-1 (kw==2), where it must be 0 (masked in-kernel
    # because the flattened rows wrap).  PADLEN is a multiple of 128 so in-kernel
    # lane rolls / slices stay vreg-aligned.
    PADLEN = _round_up(HW + 2 * W + 2, 128)
    xr = x.reshape(BN, C, H, W).astype(jnp.float32)
    xh = jnp.pad(xr, ((0, 0), (0, 0), (1, 1), (0, 0)))             # (BN, C, H+2, W)
    xf = xh.reshape(BN, C, (H + 2) * W)
    xf = jnp.pad(xf, ((0, 0), (0, 0), (1, PADLEN - (H + 2) * W - 1)))  # (BN, C, PADLEN)

    # Boundary masks for the left/right column taps (1.0 keep / 0.0 zero).
    col = jnp.arange(HW, dtype=jnp.int32) % W
    masks = jnp.stack([(col != 0), (col != W - 1)]).astype(jnp.float32)   # (2, HW)

    # ---- per-generation tiling / VMEM sizing ---------------------------------
    vmem_cap, cores = _tpu_vmem_and_cores()
    budget = min(vmem_cap // 4, 24 * 1024 * 1024)         # 24 MiB v5e/v6e, 16 MiB v7x
    vmem_limit = int(min(vmem_cap // 2, 64 * 1024 * 1024))
    # f32 bytes, tiled-layout padded, double-buffered (input block + output block)
    per_img = 2 * 4 * (_round_up(C, 8) * PADLEN
                       + _round_up(COUT, 8) * _round_up(HW, 128))
    fixed = 4 * _round_up(9 * C, 8) * _round_up(HW, 128) + (1 << 20)   # patch scratch + slack
    TB = _pick_tb(BN, per_img, fixed, budget, cores)

    taps = [(kh, kw) for kh in range(3) for kw in range(3)]

    def kernel(xf_ref, w_ref, shift_ref, m_ref, o_ref, patch_ref):
        # xf_ref:    (TB, C, PADLEN)  flattened H-padded input rows
        # w_ref:     (COUT, 9C)       BN-scale-folded weights (tap-major columns)
        # shift_ref: (COUT, 1)        folded shift = beta + (bias - mean)*scale
        # m_ref:     (2, HW)          left/right boundary masks
        # o_ref:     (TB, COUT, HW)   channel-major output, spatial on lanes
        # patch_ref: (9C, HW)         VMEM scratch im2col patch matrix
        w_k = w_ref[...]
        # hoisted broadcasts (JAX does not CSE broadcast_in_dim inside the loop)
        shift_b = jnp.broadcast_to(shift_ref[...], (COUT, HW))
        mask_l = jnp.broadcast_to(m_ref[0:1, :], (C, HW))
        mask_r = jnp.broadcast_to(m_ref[1:2, :], (C, HW))

        def one_image(b):
            xs = xf_ref[b]                                   # (C, PADLEN)
            for t, (kh, kw) in enumerate(taps):
                s = kh * W + kw                              # static tap offset
                xt = pltpu.roll(xs, PADLEN - s, 1) if s else xs
                v = lax.slice_in_dim(xt, 0, HW, axis=1)      # (C, HW), lane-aligned
                if kw == 0:
                    v = v * mask_l                           # zero the wrapped left col
                elif kw == 2:
                    v = v * mask_r                           # zero the wrapped right col
                patch_ref[t * C:(t + 1) * C, :] = v
            # one MXU call per image: (17, 9C) @ (9C, HW)
            acc = jnp.dot(w_k, patch_ref[...], preferred_element_type=jnp.float32)
            o_ref[b] = jnp.maximum(acc + shift_b, 0.0)

        if TB <= 8:
            for b in range(TB):                  # small TB: bounded static unroll
                one_image(b)
        else:
            def body(b, carry):                  # large TB: keep vreg pressure flat
                one_image(b)
                return carry
            lax.fori_loop(0, TB, body, 0, unroll=4)

    out = pl.pallas_call(
        kernel,
        out_shape=jax.ShapeDtypeStruct((BN, COUT, HW), jnp.float32),
        grid=(BN // TB,),
        in_specs=[
            pl.BlockSpec((TB, C, PADLEN), lambda g: (g, 0, 0)),
            pl.BlockSpec((COUT, 9 * C), lambda g: (0, 0)),
            pl.BlockSpec((COUT, 1), lambda g: (0, 0)),
            pl.BlockSpec((2, HW), lambda g: (0, 0)),
        ],
        out_specs=pl.BlockSpec((TB, COUT, HW), lambda g: (g, 0, 0)),
        scratch_shapes=[pltpu.VMEM((9 * C, HW), jnp.float32)],
        compiler_params=pltpu.CompilerParams(
            dimension_semantics=("parallel",),
            vmem_limit_bytes=vmem_limit),
    )(xf, w_mat, shift, masks)

    # (BN, 17, H*W) -> (B, N, 17, H, W): contiguous reshape only, no transpose.
    return out.reshape(B, N, COUT, H, W)


def decoder_reference(x, w_oihw, bias, gamma, beta, running_mean, running_var):
    """Pure-JAX reference matching the PyTorch forward (eval-mode BN)."""
    B, N, C, H, W = x.shape
    xr = x.reshape(B * N, C, H, W)
    y = lax.conv_general_dilated(
        xr, w_oihw, window_strides=(1, 1), padding=((1, 1), (1, 1)),
        dimension_numbers=("NCHW", "OIHW", "NCHW"))
    y = y + bias[None, :, None, None]
    y = (y - running_mean[None, :, None, None]) / jnp.sqrt(
        running_var[None, :, None, None] + EPS)
    y = y * gamma[None, :, None, None] + beta[None, :, None, None]
    y = jnp.maximum(y, 0.0)
    return y.reshape(B, N, COUT, H, W)


if __name__ == "__main__":
    # small shapes consistent with the module
    B, N, encode_dim, H, W = 2, 2, 4, 16, 16

    key = jax.random.PRNGKey(0)
    kx, kw, kb, kg, kbe, km, kv = jax.random.split(key, 7)

    x = jax.random.normal(kx, (B, N, encode_dim, H, W), jnp.float32)

    # deterministic synthetic parameters (shapes from Conv2d / BatchNorm2d)
    w_oihw = 0.1 * jax.random.normal(kw, (COUT, encode_dim, 3, 3), jnp.float32)
    bias = 0.1 * jax.random.normal(kb, (COUT,), jnp.float32)
    gamma = 1.0 + 0.1 * jax.random.normal(kg, (COUT,), jnp.float32)
    beta = 0.1 * jax.random.normal(kbe, (COUT,), jnp.float32)
    running_mean = 0.1 * jax.random.normal(km, (COUT,), jnp.float32)
    running_var = 1.0 + 0.1 * jax.random.uniform(kv, (COUT,), jnp.float32)
    # TODO(synk): training-mode BatchNorm (batch statistics) not implemented;
    # inference-mode running-stat normalization is folded into scale/shift.

    out = decoder_forward(x, w_oihw, bias, gamma, beta, running_mean, running_var)
    out = jax.block_until_ready(out)

    ref = decoder_reference(x, w_oihw, bias, gamma, beta, running_mean, running_var)
    assert out.shape == (B, N, COUT, H, W), out.shape
    assert jnp.allclose(out, ref, rtol=1e-4, atol=1e-4), float(
        jnp.max(jnp.abs(out - ref)))

    print("KERNEL_OK")
</pallas_src>

<mosaic_0001>
module attributes {stable_mosaic.version = 11 : i64} {
  func.func @kernel(%arg0: i32, %arg1: memref<4x4x384xf32, #tpu.memory_space<vmem>>, %arg2: memref<17x36xf32, #tpu.memory_space<vmem>>, %arg3: memref<17x1xf32, #tpu.memory_space<vmem>>, %arg4: memref<2x256xf32, #tpu.memory_space<vmem>>, %arg5: memref<4x17x256xf32, #tpu.memory_space<vmem>>, %arg6: memref<36x256xf32, #tpu.memory_space<vmem>>) attributes {dimension_semantics = [#tpu.dimension_semantics<parallel>], iteration_bounds = array<i64: 1>, scalar_prefetch = 0 : i64, scratch_operands = 1 : i64, tpu.core_type = #tpu.core_type<tc>, window_params = [{transform_indices = @transform_0, window_bounds = array<i64: 4, 4, 384>}, {pipeline_mode = #tpu.pipeline_mode<synchronous>, transform_indices = @transform_1, window_bounds = array<i64: 17, 36>}, {pipeline_mode = #tpu.pipeline_mode<synchronous>, transform_indices = @transform_2, window_bounds = array<i64: 17, 1>}, {pipeline_mode = #tpu.pipeline_mode<synchronous>, transform_indices = @transform_3, window_bounds = array<i64: 2, 256>}, {transform_indices = @transform_4, window_bounds = array<i64: 4, 17, 256>}]} {
    %c0 = arith.constant 0 : index
    %c0_0 = arith.constant 0 : index
    %0 = vector.load %arg2[%c0, %c0_0] : memref<17x36xf32, #tpu.memory_space<vmem>>, vector<17x36xf32>
    %c0_1 = arith.constant 0 : index
    %c0_2 = arith.constant 0 : index
    %1 = vector.load %arg3[%c0_1, %c0_2] : memref<17x1xf32, #tpu.memory_space<vmem>>, vector<17x1xf32>
    %2 = vector.shape_cast %1 : vector<17x1xf32> to vector<17x1xf32>
    %3 = vector.broadcast %2 : vector<17x1xf32> to vector<17x256xf32>
    %c0_3 = arith.constant 0 : index
    %c0_4 = arith.constant 0 : index
    %4 = vector.load %arg4[%c0_3, %c0_4] : memref<2x256xf32, #tpu.memory_space<vmem>>, vector<1x256xf32>
    %5 = vector.shape_cast %4 : vector<1x256xf32> to vector<1x256xf32>
    %6 = vector.broadcast %5 : vector<1x256xf32> to vector<4x256xf32>
    %c1 = arith.constant 1 : index
    %c0_5 = arith.constant 0 : index
    %7 = vector.load %arg4[%c1, %c0_5] : memref<2x256xf32, #tpu.memory_space<vmem>>, vector<1x256xf32>
    %8 = vector.shape_cast %7 : vector<1x256xf32> to vector<1x256xf32>
    %9 = vector.broadcast %8 : vector<1x256xf32> to vector<4x256xf32>
    %c0_6 = arith.constant 0 : index
    %c0_7 = arith.constant 0 : index
    %c0_8 = arith.constant 0 : index
    %10 = vector.load %arg1[%c0_6, %c0_7, %c0_8] : memref<4x4x384xf32, #tpu.memory_space<vmem>>, vector<1x4x384xf32>
    %11 = vector.shape_cast %10 : vector<1x4x384xf32> to vector<4x384xf32>
    %12 = vector.extract_strided_slice %11 {offsets = [0, 0], sizes = [4, 256], strides = [1, 1]} : vector<4x384xf32> to vector<4x256xf32>
    %13 = arith.mulf %12, %6 : vector<4x256xf32>
    %c0_9 = arith.constant 0 : index
    %c0_10 = arith.constant 0 : index
    %14 = vector.load %arg6[%c0_9, %c0_10] : memref<36x256xf32, #tpu.memory_space<vmem>>, vector<4x256xf32>
    tpu.vector_store %arg6[%c0_9, %c0_10], %13 {strides = array<i32>} : memref<36x256xf32, #tpu.memory_space<vmem>>, vector<4x256xf32>,
    %c383_i32 = arith.constant 383 : i32
    %15 = tpu.dynamic_rotate %11 by %c383_i32 dim 1 : vector<4x384xf32>, i32 -> vector<4x384xf32>
    %16 = vector.extract_strided_slice %15 {offsets = [0, 0], sizes = [4, 256], strides = [1, 1]} : vector<4x384xf32> to vector<4x256xf32>
    %c4 = arith.constant 4 : index
    %c0_11 = arith.constant 0 : index
    %17 = vector.load %arg6[%c4, %c0_11] : memref<36x256xf32, #tpu.memory_space<vmem>>, vector<4x256xf32>
    tpu.vector_store %arg6[%c4, %c0_11], %16 {strides = array<i32>} : memref<36x256xf32, #tpu.memory_space<vmem>>, vector<4x256xf32>,
    %c382_i32 = arith.constant 382 : i32
    %18 = tpu.dynamic_rotate %11 by %c382_i32 dim 1 : vector<4x384xf32>, i32 -> vector<4x384xf32>
    %19 = vector.extract_strided_slice %18 {offsets = [0, 0], sizes = [4, 256], strides = [1, 1]} : vector<4x384xf32> to vector<4x256xf32>
    %20 = arith.mulf %19, %9 : vector<4x256xf32>
    %c8 = arith.constant 8 : index
    %c0_12 = arith.constant 0 : index
    %21 = vector.load %arg6[%c8, %c0_12] : memref<36x256xf32, #tpu.memory_space<vmem>>, vector<4x256xf32>
    tpu.vector_store %arg6[%c8, %c0_12], %20 {strides = array<i32>} : memref<36x256xf32, #tpu.memory_space<vmem>>, vector<4x256xf32>,
    %c368_i32 = arith.constant 368 : i32
    %22 = tpu.dynamic_rotate %11 by %c368_i32 dim 1 : vector<4x384xf32>, i32 -> vector<4x384xf32>
    %23 = vector.extract_strided_slice %22 {offsets = [0, 0], sizes = [4, 256], strides = [1, 1]} : vector<4x384xf32> to vector<4x256xf32>
    %24 = arith.mulf %23, %6 : vector<4x256xf32>
    %c12 = arith.constant 12 : index
    %c0_13 = arith.constant 0 : index
    %25 = vector.load %arg6[%c12, %c0_13] : memref<36x256xf32, #tpu.memory_space<vmem>>, vector<4x256xf32>
    tpu.vector_store %arg6[%c12, %c0_13], %24 {strides = array<i32>} : memref<36x256xf32, #tpu.memory_space<vmem>>, vector<4x256xf32>,
    %c367_i32 = arith.constant 367 : i32
    %26 = tpu.dynamic_rotate %11 by %c367_i32 dim 1 : vector<4x384xf32>, i32 -> vector<4x384xf32>
    %27 = vector.extract_strided_slice %26 {offsets = [0, 0], sizes = [4, 256], strides = [1, 1]} : vector<4x384xf32> to vector<4x256xf32>
    %c16 = arith.constant 16 : index
    %c0_14 = arith.constant 0 : index
    %28 = vector.load %arg6[%c16, %c0_14] : memref<36x256xf32, #tpu.memory_space<vmem>>, vector<4x256xf32>
    tpu.vector_store %arg6[%c16, %c0_14], %27 {strides = array<i32>} : memref<36x256xf32, #tpu.memory_space<vmem>>, vector<4x256xf32>,
    %c366_i32 = arith.constant 366 : i32
    %29 = tpu.dynamic_rotate %11 by %c366_i32 dim 1 : vector<4x384xf32>, i32 -> vector<4x384xf32>
    %30 = vector.extract_strided_slice %29 {offsets = [0, 0], sizes = [4, 256], strides = [1, 1]} : vector<4x384xf32> to vector<4x256xf32>
    %31 = arith.mulf %30, %9 : vector<4x256xf32>
    %c20 = arith.constant 20 : index
    %c0_15 = arith.constant 0 : index
    %32 = vector.load %arg6[%c20, %c0_15] : memref<36x256xf32, #tpu.memory_space<vmem>>, vector<4x256xf32>
    tpu.vector_store %arg6[%c20, %c0_15], %31 {strides = array<i32>} : memref<36x256xf32, #tpu.memory_space<vmem>>, vector<4x256xf32>,
    %c352_i32 = arith.constant 352 : i32
    %33 = tpu.dynamic_rotate %11 by %c352_i32 dim 1 : vector<4x384xf32>, i32 -> vector<4x384xf32>
    %34 = vector.extract_strided_slice %33 {offsets = [0, 0], sizes = [4, 256], strides = [1, 1]} : vector<4x384xf32> to vector<4x256xf32>
    %35 = arith.mulf %34, %6 : vector<4x256xf32>
    %c24 = arith.constant 24 : index
    %c0_16 = arith.constant 0 : index
    %36 = vector.load %arg6[%c24, %c0_16] : memref<36x256xf32, #tpu.memory_space<vmem>>, vector<4x256xf32>
    tpu.vector_store %arg6[%c24, %c0_16], %35 {strides = array<i32>} : memref<36x256xf32, #tpu.memory_space<vmem>>, vector<4x256xf32>,
    %c351_i32 = arith.constant 351 : i32
    %37 = tpu.dynamic_rotate %11 by %c351_i32 dim 1 : vector<4x384xf32>, i32 -> vector<4x384xf32>
    %38 = vector.extract_strided_slice %37 {offsets = [0, 0], sizes = [4, 256], strides = [1, 1]} : vector<4x384xf32> to vector<4x256xf32>
    %c28 = arith.constant 28 : index
    %c0_17 = arith.constant 0 : index
    %39 = vector.load %arg6[%c28, %c0_17] : memref<36x256xf32, #tpu.memory_space<vmem>>, vector<4x256xf32>
    tpu.vector_store %arg6[%c28, %c0_17], %38 {strides = array<i32>} : memref<36x256xf32, #tpu.memory_space<vmem>>, vector<4x256xf32>,
    %c350_i32 = arith.constant 350 : i32
    %40 = tpu.dynamic_rotate %11 by %c350_i32 dim 1 : vector<4x384xf32>, i32 -> vector<4x384xf32>
    %41 = vector.extract_strided_slice %40 {offsets = [0, 0], sizes = [4, 256], strides = [1, 1]} : vector<4x384xf32> to vector<4x256xf32>
    %42 = arith.mulf %41, %9 : vector<4x256xf32>
    %c32 = arith.constant 32 : index
    %c0_18 = arith.constant 0 : index
    %43 = vector.load %arg6[%c32, %c0_18] : memref<36x256xf32, #tpu.memory_space<vmem>>, vector<4x256xf32>
    tpu.vector_store %arg6[%c32, %c0_18], %42 {strides = array<i32>} : memref<36x256xf32, #tpu.memory_space<vmem>>, vector<4x256xf32>,
    %c0_19 = arith.constant 0 : index
    %c0_20 = arith.constant 0 : index
    %44 = vector.load %arg6[%c0_19, %c0_20] : memref<36x256xf32, #tpu.memory_space<vmem>>, vector<36x256xf32>
    %cst = arith.constant dense<0.000000e+00> : vector<17x256xf32>
    %45 = tpu.matmul %0, %44, %cst {dimension_numbers = #tpu.dot_dimension_numbers<[1], [0], [0], [1], [0, 0, 1, 1], [], []>} : vector<17x36xf32>, vector<36x256xf32>, vector<17x256xf32> -> vector<17x256xf32>
    %46 = arith.addf %45, %3 : vector<17x256xf32>
    %cst_21 = arith.constant 0.000000e+00 : f32
    %47 = vector.broadcast %cst_21 : f32 to vector<17x256xf32>
    %48 = arith.maximumf %46, %47 : vector<17x256xf32>
    %c0_22 = arith.constant 0 : index
    %c0_23 = arith.constant 0 : index
    %c0_24 = arith.constant 0 : index
    %49 = vector.load %arg5[%c0_22, %c0_23, %c0_24] : memref<4x17x256xf32, #tpu.memory_space<vmem>>, vector<1x17x256xf32>
    %50 = vector.shape_cast %49 : vector<1x17x256xf32> to vector<17x256xf32>
    %51 = vector.shape_cast %48 : vector<17x256xf32> to vector<1x17x256xf32>
    tpu.vector_store %arg5[%c0_22, %c0_23, %c0_24], %51 {strides = array<i32>} : memref<4x17x256xf32, #tpu.memory_space<vmem>>, vector<1x17x256xf32>,
    %c1_25 = arith.constant 1 : index
    %c0_26 = arith.constant 0 : index
    %c0_27 = arith.constant 0 : index
    %52 = vector.load %arg1[%c1_25, %c0_26, %c0_27] : memref<4x4x384xf32, #tpu.memory_space<vmem>>, vector<1x4x384xf32>
    %53 = vector.shape_cast %52 : vector<1x4x384xf32> to vector<4x384xf32>
    %54 = vector.extract_strided_slice %53 {offsets = [0, 0], sizes = [4, 256], strides = [1, 1]} : vector<4x384xf32> to vector<4x256xf32>
    %55 = arith.mulf %54, %6 : vector<4x256xf32>
    %c0_28 = arith.constant 0 : index
    %c0_29 = arith.constant 0 : index
    %56 = vector.load %arg6[%c0_28, %c0_29] : memref<36x256xf32, #tpu.memory_space<vmem>>, vector<4x256xf32>
    tpu.vector_store %arg6[%c0_28, %c0_29], %55 {strides = array<i32>} : memref<36x256xf32, #tpu.memory_space<vmem>>, vector<4x256xf32>,
    %c383_i32_30 = arith.constant 383 : i32
    %57 = tpu.dynamic_rotate %53 by %c383_i32_30 dim 1 : vector<4x384xf32>, i32 -> vector<4x384xf32>
    %58 = vector.extract_strided_slice %57 {offsets = [0, 0], sizes = [4, 256], strides = [1, 1]} : vector<4x384xf32> to vector<4x256xf32>
    %c4_31 = arith.constant 4 : index
    %c0_32 = arith.constant 0 : index
    %59 = vector.load %arg6[%c4_31, %c0_32] : memref<36x256xf32, #tpu.memory_space<vmem>>, vector<4x256xf32>
    tpu.vector_store %arg6[%c4_31, %c0_32], %58 {strides = array<i32>} : memref<36x256xf32, #tpu.memory_space<vmem>>, vector<4x256xf32>,
    %c382_i32_33 = arith.constant 382 : i32
    %60 = tpu.dynamic_rotate %53 by %c382_i32_33 dim 1 : vector<4x384xf32>, i32 -> vector<4x384xf32>
    %61 = vector.extract_strided_slice %60 {offsets = [0, 0], sizes = [4, 256], strides = [1, 1]} : vector<4x384xf32> to vector<4x256xf32>
    %62 = arith.mulf %61, %9 : vector<4x256xf32>
    %c8_34 = arith.constant 8 : index
    %c0_35 = arith.constant 0 : index
    %63 = vector.load %arg6[%c8_34, %c0_35] : memref<36x256xf32, #tpu.memory_space<vmem>>, vector<4x256xf32>
    tpu.vector_store %arg6[%c8_34, %c0_35], %62 {strides = array<i32>} : memref<36x256xf32, #tpu.memory_space<vmem>>, vector<4x256xf32>,
    %c368_i32_36 = arith.constant 368 : i32
    %64 = tpu.dynamic_rotate %53 by %c368_i32_36 dim 1 : vector<4x384xf32>, i32 -> vector<4x384xf32>
    %65 = vector.extract_strided_slice %64 {offsets = [0, 0], sizes = [4, 256], strides = [1, 1]} : vector<4x384xf32> to vector<4x256xf32>
    %66 = arith.mulf %65, %6 : vector<4x256xf32>
    %c12_37 = arith.constant 12 : index
    %c0_38 = arith.constant 0 : index
    %67 = vector.load %arg6[%c12_37, %c0_38] : memref<36x256xf32, #tpu.memory_space<vmem>>, vector<4x256xf32>
    tpu.vector_store %arg6[%c12_37, %c0_38], %66 {strides = array<i32>} : memref<36x256xf32, #tpu.memory_space<vmem>>, vector<4x256xf32>,
    %c367_i32_39 = arith.constant 367 : i32
    %68 = tpu.dynamic_rotate %53 by %c367_i32_39 dim 1 : vector<4x384xf32>, i32 -> vector<4x384xf32>
    %69 = vector.extract_strided_slice %68 {offsets = [0, 0], sizes = [4, 256], strides = [1, 1]} : vector<4x384xf32> to vector<4x256xf32>
    %c16_40 = arith.constant 16 : index
    %c0_41 = arith.constant 0 : index
    %70 = vector.load %arg6[%c16_40, %c0_41] : memref<36x256xf32, #tpu.memory_space<vmem>>, vector<4x256xf32>
    tpu.vector_store %arg6[%c16_40, %c0_41], %69 {strides = array<i32>} : memref<36x256xf32, #tpu.memory_space<vmem>>, vector<4x256xf32>,
    %c366_i32_42 = arith.constant 366 : i32
    %71 = tpu.dynamic_rotate %53 by %c366_i32_42 dim 1 : vector<4x384xf32>, i32 -> vector<4x384xf32>
    %72 = vector.extract_strided_slice %71 {offsets = [0, 0], sizes = [4, 256], strides = [1, 1]} : vector<4x384xf32> to vector<4x256xf32>
    %73 = arith.mulf %72, %9 : vector<4x256xf32>
    %c20_43 = arith.constant 20 : index
    %c0_44 = arith.constant 0 : index
    %74 = vector.load %arg6[%c20_43, %c0_44] : memref<36x256xf32, #tpu.memory_space<vmem>>, vector<4x256xf32>
    tpu.vector_store %arg6[%c20_43, %c0_44], %73 {strides = array<i32>} : memref<36x256xf32, #tpu.memory_space<vmem>>, vector<4x256xf32>,
    %c352_i32_45 = arith.constant 352 : i32
    %75 = tpu.dynamic_rotate %53 by %c352_i32_45 dim 1 : vector<4x384xf32>, i32 -> vector<4x384xf32>
    %76 = vector.extract_strided_slice %75 {offsets = [0, 0], sizes = [4, 256], strides = [1, 1]} : vector<4x384xf32> to vector<4x256xf32>
    %77 = arith.mulf %76, %6 : vector<4x256xf32>
    %c24_46 = arith.constant 24 : index
    %c0_47 = arith.constant 0 : index
    %78 = vector.load %arg6[%c24_46, %c0_47] : memref<36x256xf32, #tpu.memory_space<vmem>>, vector<4x256xf32>
    tpu.vector_store %arg6[%c24_46, %c0_47], %77 {strides = array<i32>} : memref<36x256xf32, #tpu.memory_space<vmem>>, vector<4x256xf32>,
    %c351_i32_48 = arith.constant 351 : i32
    %79 = tpu.dynamic_rotate %53 by %c351_i32_48 dim 1 : vector<4x384xf32>, i32 -> vector<4x384xf32>
    %80 = vector.extract_strided_slice %79 {offsets = [0, 0], sizes = [4, 256], strides = [1, 1]} : vector<4x384xf32> to vector<4x256xf32>
    %c28_49 = arith.constant 28 : index
    %c0_50 = arith.constant 0 : index
    %81 = vector.load %arg6[%c28_49, %c0_50] : memref<36x256xf32, #tpu.memory_space<vmem>>, vector<4x256xf32>
    tpu.vector_store %arg6[%c28_49, %c0_50], %80 {strides = array<i32>} : memref<36x256xf32, #tpu.memory_space<vmem>>, vector<4x256xf32>,
    %c350_i32_51 = arith.constant 350 : i32
    %82 = tpu.dynamic_rotate %53 by %c350_i32_51 dim 1 : vector<4x384xf32>, i32 -> vector<4x384xf32>
    %83 = vector.extract_strided_slice %82 {offsets = [0, 0], sizes = [4, 256], strides = [1, 1]} : vector<4x384xf32> to vector<4x256xf32>
    %84 = arith.mulf %83, %9 : vector<4x256xf32>
    %c32_52 = arith.constant 32 : index
    %c0_53 = arith.constant 0 : index
    %85 = vector.load %arg6[%c32_52, %c0_53] : memref<36x256xf32, #tpu.memory_space<vmem>>, vector<4x256xf32>
    tpu.vector_store %arg6[%c32_52, %c0_53], %84 {strides = array<i32>} : memref<36x256xf32, #tpu.memory_space<vmem>>, vector<4x256xf32>,
    %c0_54 = arith.constant 0 : index
    %c0_55 = arith.constant 0 : index
    %86 = vector.load %arg6[%c0_54, %c0_55] : memref<36x256xf32, #tpu.memory_space<vmem>>, vector<36x256xf32>
    %cst_56 = arith.constant dense<0.000000e+00> : vector<17x256xf32>
    %87 = tpu.matmul %0, %86, %cst_56 {dimension_numbers = #tpu.dot_dimension_numbers<[1], [0], [0], [1], [0, 0, 1, 1], [], []>} : vector<17x36xf32>, vector<36x256xf32>, vector<17x256xf32> -> vector<17x256xf32>
    %88 = arith.addf %87, %3 : vector<17x256xf32>
    %cst_57 = arith.constant 0.000000e+00 : f32
    %89 = vector.broadcast %cst_57 : f32 to vector<17x256xf32>
    %90 = arith.maximumf %88, %89 : vector<17x256xf32>
    %c1_58 = arith.constant 1 : index
    %c0_59 = arith.constant 0 : index
    %c0_60 = arith.constant 0 : index
    %91 = vector.load %arg5[%c1_58, %c0_59, %c0_60] : memref<4x17x256xf32, #tpu.memory_space<vmem>>, vector<1x17x256xf32>
    %92 = vector.shape_cast %91 : vector<1x17x256xf32> to vector<17x256xf32>
    %93 = vector.shape_cast %90 : vector<17x256xf32> to vector<1x17x256xf32>
    tpu.vector_store %arg5[%c1_58, %c0_59, %c0_60], %93 {strides = array<i32>} : memref<4x17x256xf32, #tpu.memory_space<vmem>>, vector<1x17x256xf32>,
    %c2 = arith.constant 2 : index
    %c0_61 = arith.constant 0 : index
    %c0_62 = arith.constant 0 : index
    %94 = vector.load %arg1[%c2, %c0_61, %c0_62] : memref<4x4x384xf32, #tpu.memory_space<vmem>>, vector<1x4x384xf32>
    %95 = vector.shape_cast %94 : vector<1x4x384xf32> to vector<4x384xf32>
    %96 = vector.extract_strided_slice %95 {offsets = [0, 0], sizes = [4, 256], strides = [1, 1]} : vector<4x384xf32> to vector<4x256xf32>
    %97 = arith.mulf %96, %6 : vector<4x256xf32>
    %c0_63 = arith.constant 0 : index
    %c0_64 = arith.constant 0 : index
    %98 = vector.load %arg6[%c0_63, %c0_64] : memref<36x256xf32, #tpu.memory_space<vmem>>, vector<4x256xf32>
    tpu.vector_store %arg6[%c0_63, %c0_64], %97 {strides = array<i32>} : memref<36x256xf32, #tpu.memory_space<vmem>>, vector<4x256xf32>,
    %c383_i32_65 = arith.constant 383 : i32
    %99 = tpu.dynamic_rotate %95 by %c383_i32_65 dim 1 : vector<4x384xf32>, i32 -> vector<4x384xf32>
    %100 = vector.extract_strided_slice %99 {offsets = [0, 0], sizes = [4, 256], strides = [1, 1]} : vector<4x384xf32> to vector<4x256xf32>
    %c4_66 = arith.constant 4 : index
    %c0_67 = arith.constant 0 : index
    %101 = vector.load %arg6[%c4_66, %c0_67] : memref<36x256xf32, #tpu.memory_space<vmem>>, vector<4x256xf32>
    tpu.vector_store %arg6[%c4_66, %c0_67], %100 {strides = array<i32>} : memref<36x256xf32, #tpu.memory_space<vmem>>, vector<4x256xf32>,
    %c382_i32_68 = arith.constant 382 : i32
    %102 = tpu.dynamic_rotate %95 by %c382_i32_68 dim 1 : vector<4x384xf32>, i32 -> vector<4x384xf32>
    %103 = vector.extract_strided_slice %102 {offsets = [0, 0], sizes = [4, 256], strides = [1, 1]} : vector<4x384xf32> to vector<4x256xf32>
    %104 = arith.mulf %103, %9 : vector<4x256xf32>
    %c8_69 = arith.constant 8 : index
    %c0_70 = arith.constant 0 : index
    %105 = vector.load %arg6[%c8_69, %c0_70] : memref<36x256xf32, #tpu.memory_space<vmem>>, vector<4x256xf32>
    tpu.vector_store %arg6[%c8_69, %c0_70], %104 {strides = array<i32>} : memref<36x256xf32, #tpu.memory_space<vmem>>, vector<4x256xf32>,
    %c368_i32_71 = arith.constant 368 : i32
    %106 = tpu.dynamic_rotate %95 by %c368_i32_71 dim 1 : vector<4x384xf32>, i32 -> vector<4x384xf32>
    %107 = vector.extract_strided_slice %106 {offsets = [0, 0], sizes = [4, 256], strides = [1, 1]} : vector<4x384xf32> to vector<4x256xf32>
    %108 = arith.mulf %107, %6 : vector<4x256xf32>
    %c12_72 = arith.constant 12 : index
    %c0_73 = arith.constant 0 : index
    %109 = vector.load %arg6[%c12_72, %c0_73] : memref<36x256xf32, #tpu.memory_space<vmem>>, vector<4x256xf32>
    tpu.vector_store %arg6[%c12_72, %c0_73], %108 {strides = array<i32>} : memref<36x256xf32, #tpu.memory_space<vmem>>, vector<4x256xf32>,
    %c367_i32_74 = arith.constant 367 : i32
    %110 = tpu.dynamic_rotate %95 by %c367_i32_74 dim 1 : vector<4x384xf32>, i32 -> vector<4x384xf32>
    %111 = vector.extract_strided_slice %110 {offsets = [0, 0], sizes = [4, 256], strides = [1, 1]} : vector<4x384xf32> to vector<4x256xf32>
    %c16_75 = arith.constant 16 : index
    %c0_76 = arith.constant 0 : index
    %112 = vector.load %arg6[%c16_75, %c0_76] : memref<36x256xf32, #tpu.memory_space<vmem>>, vector<4x256xf32>
    tpu.vector_store %arg6[%c16_75, %c0_76], %111 {strides = array<i32>} : memref<36x256xf32, #tpu.memory_space<vmem>>, vector<4x256xf32>,
    %c366_i32_77 = arith.constant 366 : i32
    %113 = tpu.dynamic_rotate %95 by %c366_i32_77 dim 1 : vector<4x384xf32>, i32 -> vector<4x384xf32>
    %114 = vector.extract_strided_slice %113 {offsets = [0, 0], sizes = [4, 256], strides = [1, 1]} : vector<4x384xf32> to vector<4x256xf32>
    %115 = arith.mulf %114, %9 : vector<4x256xf32>
    %c20_78 = arith.constant 20 : index
    %c0_79 = arith.constant 0 : index
    %116 = vector.load %arg6[%c20_78, %c0_79] : memref<36x256xf32, #tpu.memory_space<vmem>>, vector<4x256xf32>
    tpu.vector_store %arg6[%c20_78, %c0_79], %115 {strides = array<i32>} : memref<36x256xf32, #tpu.memory_space<vmem>>, vector<4x256xf32>,
    %c352_i32_80 = arith.constant 352 : i32
    %117 = tpu.dynamic_rotate %95 by %c352_i32_80 dim 1 : vector<4x384xf32>, i32 -> vector<4x384xf32>
    %118 = vector.extract_strided_slice %117 {offsets = [0, 0], sizes = [4, 256], strides = [1, 1]} : vector<4x384xf32> to vector<4x256xf32>
    %119 = arith.mulf %118, %6 : vector<4x256xf32>
    %c24_81 = arith.constant 24 : index
    %c0_82 = arith.constant 0 : index
    %120 = vector.load %arg6[%c24_81, %c0_82] : memref<36x256xf32, #tpu.memory_space<vmem>>, vector<4x256xf32>
    tpu.vector_store %arg6[%c24_81, %c0_82], %119 {strides = array<i32>} : memref<36x256xf32, #tpu.memory_space<vmem>>, vector<4x256xf32>,
    %c351_i32_83 = arith.constant 351 : i32
    %121 = tpu.dynamic_rotate %95 by %c351_i32_83 dim 1 : vector<4x384xf32>, i32 -> vector<4x384xf32>
    %122 = vector.extract_strided_slice %121 {offsets = [0, 0], sizes = [4, 256], strides = [1, 1]} : vector<4x384xf32> to vector<4x256xf32>
    %c28_84 = arith.constant 28 : index
    %c0_85 = arith.constant 0 : index
    %123 = vector.load %arg6[%c28_84, %c0_85] : memref<36x256xf32, #tpu.memory_space<vmem>>, vector<4x256xf32>
    tpu.vector_store %arg6[%c28_84, %c0_85], %122 {strides = array<i32>} : memref<36x256xf32, #tpu.memory_space<vmem>>, vector<4x256xf32>,
    %c350_i32_86 = arith.constant 350 : i32
    %124 = tpu.dynamic_rotate %95 by %c350_i32_86 dim 1 : vector<4x384xf32>, i32 -> vector<4x384xf32>
    %125 = vector.extract_strided_slice %124 {offsets = [0, 0], sizes = [4, 256], strides = [1, 1]} : vector<4x384xf32> to vector<4x256xf32>
    %126 = arith.mulf %125, %9 : vector<4x256xf32>
    %c32_87 = arith.constant 32 : index
    %c0_88 = arith.constant 0 : index
    %127 = vector.load %arg6[%c32_87, %c0_88] : memref<36x256xf32, #tpu.memory_space<vmem>>, vector<4x256xf32>
    tpu.vector_store %arg6[%c32_87, %c0_88], %126 {strides = array<i32>} : memref<36x256xf32, #tpu.memory_space<vmem>>, vector<4x256xf32>,
    %c0_89 = arith.constant 0 : index
    %c0_90 = arith.constant 0 : index
    %128 = vector.load %arg6[%c0_89, %c0_90] : memref<36x256xf32, #tpu.memory_space<vmem>>, vector<36x256xf32>
    %cst_91 = arith.constant dense<0.000000e+00> : vector<17x256xf32>
    %129 = tpu.matmul %0, %128, %cst_91 {dimension_numbers = #tpu.dot_dimension_numbers<[1], [0], [0], [1], [0, 0, 1, 1], [], []>} : vector<17x36xf32>, vector<36x256xf32>, vector<17x256xf32> -> vector<17x256xf32>
    %130 = arith.addf %129, %3 : vector<17x256xf32>
    %cst_92 = arith.constant 0.000000e+00 : f32
    %131 = vector.broadcast %cst_92 : f32 to vector<17x256xf32>
    %132 = arith.maximumf %130, %131 : vector<17x256xf32>
    %c2_93 = arith.constant 2 : index
    %c0_94 = arith.constant 0 : index
    %c0_95 = arith.constant 0 : index
    %133 = vector.load %arg5[%c2_93, %c0_94, %c0_95] : memref<4x17x256xf32, #tpu.memory_space<vmem>>, vector<1x17x256xf32>
    %134 = vector.shape_cast %133 : vector<1x17x256xf32> to vector<17x256xf32>
    %135 = vector.shape_cast %132 : vector<17x256xf32> to vector<1x17x256xf32>
    tpu.vector_store %arg5[%c2_93, %c0_94, %c0_95], %135 {strides = array<i32>} : memref<4x17x256xf32, #tpu.memory_space<vmem>>, vector<1x17x256xf32>,
    %c3 = arith.constant 3 : index
    %c0_96 = arith.constant 0 : index
    %c0_97 = arith.constant 0 : index
    %136 = vector.load %arg1[%c3, %c0_96, %c0_97] : memref<4x4x384xf32, #tpu.memory_space<vmem>>, vector<1x4x384xf32>
    %137 = vector.shape_cast %136 : vector<1x4x384xf32> to vector<4x384xf32>
    %138 = vector.extract_strided_slice %137 {offsets = [0, 0], sizes = [4, 256], strides = [1, 1]} : vector<4x384xf32> to vector<4x256xf32>
    %139 = arith.mulf %138, %6 : vector<4x256xf32>
    %c0_98 = arith.constant 0 : index
    %c0_99 = arith.constant 0 : index
    %140 = vector.load %arg6[%c0_98, %c0_99] : memref<36x256xf32, #tpu.memory_space<vmem>>, vector<4x256xf32>
    tpu.vector_store %arg6[%c0_98, %c0_99], %139 {strides = array<i32>} : memref<36x256xf32, #tpu.memory_space<vmem>>, vector<4x256xf32>,
    %c383_i32_100 = arith.constant 383 : i32
    %141 = tpu.dynamic_rotate %137 by %c383_i32_100 dim 1 : vector<4x384xf32>, i32 -> vector<4x384xf32>
    %142 = vector.extract_strided_slice %141 {offsets = [0, 0], sizes = [4, 256], strides = [1, 1]} : vector<4x384xf32> to vector<4x256xf32>
    %c4_101 = arith.constant 4 : index
    %c0_102 = arith.constant 0 : index
    %143 = vector.load %arg6[%c4_101, %c0_102] : memref<36x256xf32, #tpu.memory_space<vmem>>, vector<4x256xf32>
    tpu.vector_store %arg6[%c4_101, %c0_102], %142 {strides = array<i32>} : memref<36x256xf32, #tpu.memory_space<vmem>>, vector<4x256xf32>,
    %c382_i32_103 = arith.constant 382 : i32
    %144 = tpu.dynamic_rotate %137 by %c382_i32_103 dim 1 : vector<4x384xf32>, i32 -> vector<4x384xf32>
    %145 = vector.extract_strided_slice %144 {offsets = [0, 0], sizes = [4, 256], strides = [1, 1]} : vector<4x384xf32> to vector<4x256xf32>
    %146 = arith.mulf %145, %9 : vector<4x256xf32>
    %c8_104 = arith.constant 8 : index
    %c0_105 = arith.constant 0 : index
    %147 = vector.load %arg6[%c8_104, %c0_105] : memref<36x256xf32, #tpu.memory_space<vmem>>, vector<4x256xf32>
    tpu.vector_store %arg6[%c8_104, %c0_105], %146 {strides = array<i32>} : memref<36x256xf32, #tpu.memory_space<vmem>>, vector<4x256xf32>,
    %c368_i32_106 = arith.constant 368 : i32
    %148 = tpu.dynamic_rotate %137 by %c368_i32_106 dim 1 : vector<4x384xf32>, i32 -> vector<4x384xf32>
    %149 = vector.extract_strided_slice %148 {offsets = [0, 0], sizes = [4, 256], strides = [1, 1]} : vector<4x384xf32> to vector<4x256xf32>
    %150 = arith.mulf %149, %6 : vector<4x256xf32>
    %c12_107 = arith.constant 12 : index
    %c0_108 = arith.constant 0 : index
    %151 = vector.load %arg6[%c12_107, %c0_108] : memref<36x256xf32, #tpu.memory_space<vmem>>, vector<4x256xf32>
    tpu.vector_store %arg6[%c12_107, %c0_108], %150 {strides = array<i32>} : memref<36x256xf32, #tpu.memory_space<vmem>>, vector<4x256xf32>,
    %c367_i32_109 = arith.constant 367 : i32
    %152 = tpu.dynamic_rotate %137 by %c367_i32_109 dim 1 : vector<4x384xf32>, i32 -> vector<4x384xf32>
    %153 = vector.extract_strided_slice %152 {offsets = [0, 0], sizes = [4, 256], strides = [1, 1]} : vector<4x384xf32> to vector<4x256xf32>
    %c16_110 = arith.constant 16 : index
    %c0_111 = arith.constant 0 : index
    %154 = vector.load %arg6[%c16_110, %c0_111] : memref<36x256xf32, #tpu.memory_space<vmem>>, vector<4x256xf32>
    tpu.vector_store %arg6[%c16_110, %c0_111], %153 {strides = array<i32>} : memref<36x256xf32, #tpu.memory_space<vmem>>, vector<4x256xf32>,
    %c366_i32_112 = arith.constant 366 : i32
    %155 = tpu.dynamic_rotate %137 by %c366_i32_112 dim 1 : vector<4x384xf32>, i32 -> vector<4x384xf32>
    %156 = vector.extract_strided_slice %155 {offsets = [0, 0], sizes = [4, 256], strides = [1, 1]} : vector<4x384xf32> to vector<4x256xf32>
    %157 = arith.mulf %156, %9 : vector<4x256xf32>
    %c20_113 = arith.constant 20 : index
    %c0_114 = arith.constant 0 : index
    %158 = vector.load %arg6[%c20_113, %c0_114] : memref<36x256xf32, #tpu.memory_space<vmem>>, vector<4x256xf32>
    tpu.vector_store %arg6[%c20_113, %c0_114], %157 {strides = array<i32>} : memref<36x256xf32, #tpu.memory_space<vmem>>, vector<4x256xf32>,
    %c352_i32_115 = arith.constant 352 : i32
    %159 = tpu.dynamic_rotate %137 by %c352_i32_115 dim 1 : vector<4x384xf32>, i32 -> vector<4x384xf32>
    %160 = vector.extract_strided_slice %159 {offsets = [0, 0], sizes = [4, 256], strides = [1, 1]} : vector<4x384xf32> to vector<4x256xf32>
    %161 = arith.mulf %160, %6 : vector<4x256xf32>
    %c24_116 = arith.constant 24 : index
    %c0_117 = arith.constant 0 : index
    %162 = vector.load %arg6[%c24_116, %c0_117] : memref<36x256xf32, #tpu.memory_space<vmem>>, vector<4x256xf32>
    tpu.vector_store %arg6[%c24_116, %c0_117], %161 {strides = array<i32>} : memref<36x256xf32, #tpu.memory_space<vmem>>, vector<4x256xf32>,
    %c351_i32_118 = arith.constant 351 : i32
    %163 = tpu.dynamic_rotate %137 by %c351_i32_118 dim 1 : vector<4x384xf32>, i32 -> vector<4x384xf32>
    %164 = vector.extract_strided_slice %163 {offsets = [0, 0], sizes = [4, 256], strides = [1, 1]} : vector<4x384xf32> to vector<4x256xf32>
    %c28_119 = arith.constant 28 : index
    %c0_120 = arith.constant 0 : index
    %165 = vector.load %arg6[%c28_119, %c0_120] : memref<36x256xf32, #tpu.memory_space<vmem>>, vector<4x256xf32>
    tpu.vector_store %arg6[%c28_119, %c0_120], %164 {strides = array<i32>} : memref<36x256xf32, #tpu.memory_space<vmem>>, vector<4x256xf32>,
    %c350_i32_121 = arith.constant 350 : i32
    %166 = tpu.dynamic_rotate %137 by %c350_i32_121 dim 1 : vector<4x384xf32>, i32 -> vector<4x384xf32>
    %167 = vector.extract_strided_slice %166 {offsets = [0, 0], sizes = [4, 256], strides = [1, 1]} : vector<4x384xf32> to vector<4x256xf32>
    %168 = arith.mulf %167, %9 : vector<4x256xf32>
    %c32_122 = arith.constant 32 : index
    %c0_123 = arith.constant 0 : index
    %169 = vector.load %arg6[%c32_122, %c0_123] : memref<36x256xf32, #tpu.memory_space<vmem>>, vector<4x256xf32>
    tpu.vector_store %arg6[%c32_122, %c0_123], %168 {strides = array<i32>} : memref<36x256xf32, #tpu.memory_space<vmem>>, vector<4x256xf32>,
    %c0_124 = arith.constant 0 : index
    %c0_125 = arith.constant 0 : index
    %170 = vector.load %arg6[%c0_124, %c0_125] : memref<36x256xf32, #tpu.memory_space<vmem>>, vector<36x256xf32>
    %cst_126 = arith.constant dense<0.000000e+00> : vector<17x256xf32>
    %171 = tpu.matmul %0, %170, %cst_126 {dimension_numbers = #tpu.dot_dimension_numbers<[1], [0], [0], [1], [0, 0, 1, 1], [], []>} : vector<17x36xf32>, vector<36x256xf32>, vector<17x256xf32> -> vector<17x256xf32>
    %172 = arith.addf %171, %3 : vector<17x256xf32>
    %cst_127 = arith.constant 0.000000e+00 : f32
    %173 = vector.broadcast %cst_127 : f32 to vector<17x256xf32>
    %174 = arith.maximumf %172, %173 : vector<17x256xf32>
    %c3_128 = arith.constant 3 : index
    %c0_129 = arith.constant 0 : index
    %c0_130 = arith.constant 0 : index
    %175 = vector.load %arg5[%c3_128, %c0_129, %c0_130] : memref<4x17x256xf32, #tpu.memory_space<vmem>>, vector<1x17x256xf32>
    %176 = vector.shape_cast %175 : vector<1x17x256xf32> to vector<17x256xf32>
    %177 = vector.shape_cast %174 : vector<17x256xf32> to vector<1x17x256xf32>
    tpu.vector_store %arg5[%c3_128, %c0_129, %c0_130], %177 {strides = array<i32>} : memref<4x17x256xf32, #tpu.memory_space<vmem>>, vector<1x17x256xf32>,
    return
  }
  func.func @transform_0(%arg0: i32) -> (i32, i32, i32) {
    %c0_i32 = arith.constant 0 : i32
    %c0_i32_0 = arith.constant 0 : i32
    %c0_i32_1 = arith.constant 0 : i32
    return %arg0, %c0_i32, %c0_i32_0 : i32, i32, i32
  }
  func.func @transform_1(%arg0: i32) -> (i32, i32) {
    %c0_i32 = arith.constant 0 : i32
    %c0_i32_0 = arith.constant 0 : i32
    %c0_i32_1 = arith.constant 0 : i32
    return %c0_i32, %c0_i32_0 : i32, i32
  }
  func.func @transform_2(%arg0: i32) -> (i32, i32) {
    %c0_i32 = arith.constant 0 : i32
    %c0_i32_0 = arith.constant 0 : i32
    %c0_i32_1 = arith.constant 0 : i32
    return %c0_i32, %c0_i32_0 : i32, i32
  }
  func.func @transform_3(%arg0: i32) -> (i32, i32) {
    %c0_i32 = arith.constant 0 : i32
    %c0_i32_0 = arith.constant 0 : i32
    %c0_i32_1 = arith.constant 0 : i32
    return %c0_i32, %c0_i32_0 : i32, i32
  }
  func.func @transform_4(%arg0: i32) -> (i32, i32, i32) {
    %c0_i32 = arith.constant 0 : i32
    %c0_i32_0 = arith.constant 0 : i32
    %c0_i32_1 = arith.constant 0 : i32
    return %arg0, %c0_i32, %c0_i32_0 : i32, i32, i32
  }
}

</mosaic_0001>

<bundles_post_ra>
// kernel: tpu_custom_call.1
= control target key start
LH: loop header
LB: loop body
LE: loop exit
PB: predicated region body
PF: predicated region fallthrough
CT: control target
= control target key end

     0   :  { %9 = vsyncpa [#allocation4], 0  ;;  %s2002_s0 = inlined_call_operand.hbm [shape: f32[4,4,384], index: 0, kind: input, shape index: {}]   ;;  %s2003_s1 = inlined_call_operand.vmem [shape: f32[17,36], index: 1, kind: input, shape index: {}]   ;;  %s2004_s2 = inlined_call_operand.vmem [shape: f32[17,1], index: 2, kind: input, shape index: {}]   ;;  %s2005_s3 = inlined_call_operand.hbm [shape: f32[2,256], index: 3, kind: input, shape index: {}]   ;;  %s2006_s4 = inlined_call_operand.vmem [shape: f32[4,17,256], index: 4, kind: output, shape index: {}]  }
   0x1   :  { %s15_s17 = sshll.u32 %s2002_s0, 4  ;;  %s16_s17 = int_to_ptr.hbm [resolvable:$true] %s15_s17 }
   0x2   :  { %10 = vsyncpa [#allocation6], 0  ;;  %s1350_s18 = smov [#allocation3]   ;;  %s33_s22 = sshll.u32 %s2005_s3, 4  ;;  %s34_s22 = int_to_ptr.hbm [resolvable:$true] %s33_s22 }
   0x3   :  { %s17_s19 = sshll.u32 %s1350_s18, 4  ;;  %s1351_s23 = smov 192   ;;  %s18_s19 = int_to_ptr.vmem [resolvable:$true] %s17_s19 }
   0x4   :  { %s1352_s24 = smov 12   ;;  %s1353_s25 = smov [#allocation5]  }
   0x5   :  { %23 = dma.hbm_to_vmem [thread:$0]  %s16_s17, 768, %s18_s19, [#allocation4], %s1351_s23, %s1351_s23, %s1352_s24  }
   0x6   :  { %s35_s26 = sshll.u32 %s1353_s25, 4  ;;  %s36_s26 = int_to_ptr.vmem [resolvable:$true] %s35_s26 }
   0x7   :  { %38 = dma.hbm_to_vmem [thread:$0]  %s34_s22, 64, %s36_s26, [#allocation6]  }
   0x8   :  { %1346 = dma.done.wait [#allocation4], 768  }
   0x9   :  { %1347 = vsyncadd [#allocation4], 4294966528 }
   0xa   :  { %1348 = dma.done.wait [#allocation6], 64  }
   0xb   :  { %1349 = vsyncadd [#allocation6], 4294967232  ;;  %v1354_v0 = vmov 0   ;;  %v52_v1 = vld [vmem:[%s2004_s2 + $0x10] sm:$0x1]  ;;  %v50_v2 = vld [vmem:[%s2004_s2] sm:$0xff]  ;;  %v113_v55 = vlaneseq }
   0xc   :  { %1297 = vset.pattern.permute.xlu1 %v1354_v0  ;;  %1296 = vset.pattern.permute.xlu0 %v1354_v0  ;;  %v68_v3 = vld [vmem:[#allocation5] ss:$2 sm:$0x3]  ;;  %vm84_vm0 = vcmask 1043456   ;;  %v1404_v6 = vld [vmem:[#allocation3 + $0x8] sm:$0xf] }
   0xd   :  { %65 = vperm.xlu1 %1297, %v52_v1   ;;  %55 = vperm.xlu0 %1296, %v50_v2   ;;  %v1400_v4 = vperm.slane %v68_v3, 0  ;;  %v1402_v5 = vperm.slane %v68_v3, 1  ;;  %v1406_v7 = vld [vmem:[#allocation3] sm:$0xff]  ;;  %100 = vst [vmem:[#allocation1 + $0x10] ss:$2 sm:$0xff] %v1404_v6  ;;  %v51_v11 = vld [vmem:[%s2004_s2 + $0x8] sm:$0xff] }
   0xe   :  { %s1355_s5 = smov 127   ;;  %s1356_s6 = smov 126   ;;  %v1455_v36 = vld [vmem:[#allocation3 + $0xc] sm:$0xff]  ;;  %v1462_v40 = vld [vmem:[#allocation3 + $0x14] sm:$0xf]  ;;  %v1489_v56 = vand.u32 127, %v113_v55 }
   0xf   :  { %v83_v8 = vrot.slane %v1402_v5, 4  ;;  %s1357_s2 = smov 112   ;;  %s1358_s7 = smov 111   ;;  %vm304_vm9 = vcmask 293888  }
  0x10   :  { %s1359_s8 = smov 110   ;;  %s1360_s9 = smov 96   ;;  %vm115_vm1 = vcmp.lt.s32.totalorder %v1489_v56, 127  ;;  %vm141_vm2 = vcmp.lt.s32.totalorder %v1489_v56, 126  ;;  %vm163_vm3 = vcmp.lt.s32.totalorder %v1489_v56, 112  ;;  %vm191_vm4 = vcmp.lt.s32.totalorder %v1489_v56, 111 }
  0x11   :  { %v1412_v9 = vsel %vm84_vm0, %v1400_v4, %v83_v8  ;;  %s1361_s10 = smov 95   ;;  %s1362_s11 = smov 94   ;;  %vm211_vm5 = vcmp.lt.s32.totalorder %v1489_v56, 110  ;;  %vm239_vm6 = vcmp.lt.s32.totalorder %v1489_v56, 96  ;;  %vm261_vm7 = vcmp.lt.s32.totalorder %v1489_v56, 95 }
  0x12   :  { %v87_v10 = vmul.f32 %v1412_v9, %v1406_v7  ;;  %v387_v37 = vmul.f32 %v1455_v36, %v1412_v9  ;;  %vm287_vm8 = vcmp.lt.s32.totalorder %v1489_v56, 94 }
  0x14   :  { %89 = vst [vmem:[#allocation1] ss:$2 sm:$0xff] %v87_v10  ;;  %v103_v12 = vld.sshfl [vmem:[#allocation1 + $0x10] sm:$0xff pattern:$0x75316420] }
  0x15   :  { %60 = vperm.xlu0 %1296, %v51_v11   ;;  %111 = vrot.lane.b32.xlu2 %v103_v12, %s1355_s5  ;;  %128 = vst [vmem:[#allocation1 + $0x10] ss:$2 sm:$0xff] %v1404_v6 }
  0x1b   :  { %v90_v13 = vld.sshfl [vmem:[#allocation1] sm:$0xff pattern:$0x75316420]  ;;  %v91_v14 = vld.sshfl [vmem:[#allocation1 + $0x8] sm:$0xff pattern:$0x75316420] }
  0x1c   :  { %98 = vst [vmem:[#allocation1] ss:$2 sm:$0xff] %v1406_v7  ;;  %v131_v15 = vld.sshfl [vmem:[#allocation1 + $0x10] sm:$0xff pattern:$0x75316420] }
  0x1d   :  { %94 = vst [vmem:[#allocation2 + $0x30] sm:$0xf] %v90_v13  ;;  %139 = vrot.lane.b32.xlu2 %v131_v15, %s1356_s6  ;;  %v75_v15 = vld [vmem:[#allocation5 + $0x1] ss:$2 sm:$0x3] }
  0x1e   :  { %95 = vst [vmem:[#allocation2] sm:$0xf] %v91_v14 }
  0x1f   :  { %150 = vst [vmem:[#allocation1 + $0x10] ss:$2 sm:$0xff] %v1404_v6 }
  0x23   :  { %v101_v16 = vld.sshfl [vmem:[#allocation1] sm:$0xff pattern:$0x75316420]  ;;  %v102_v17 = vld.sshfl [vmem:[#allocation1 + $0x8] sm:$0xff pattern:$0x75316420] }
  0x24   :  { %107 = vrot.lane.b32.xlu1 %v101_v16, %s1355_s5  ;;  %126 = vst [vmem:[#allocation1] ss:$2 sm:$0xff] %v1406_v7 }
  0x25   :  { %109 = vrot.lane.b32.xlu2 %v102_v17, %s1355_s5 }
  0x26   :  { %v153_v18 = vld.sshfl [vmem:[#allocation1 + $0x10] sm:$0xff pattern:$0x75316420] }
  0x27   :  { %178 = vst [vmem:[#allocation1 + $0x10] ss:$2 sm:$0xff] %v1404_v6 }
  0x2b   :  { %v130_v19 = vld.sshfl [vmem:[#allocation1 + $0x8] sm:$0xff pattern:$0x75316420]  ;;  %v129_v20 = vld.sshfl [vmem:[#allocation1] sm:$0xff pattern:$0x75316420] }
  0x2c   :  { %137 = vrot.lane.b32.xlu1 %v130_v19, %s1356_s6  ;;  %135 = vrot.lane.b32.xlu0 %v129_v20, %s1356_s6  ;;  %148 = vst [vmem:[#allocation1] ss:$2 sm:$0xff] %v1406_v7  ;;  %v1520_v19 = vperm.slane %v75_v15, 1  ;;  %v1523_v20 = vperm.slane %v75_v15, 0 }
  0x2d   :  { %161 = vrot.lane.b32.xlu2 %v153_v18, %s1357_s2 }
  0x2e   :  { %v181_v21 = vld.sshfl [vmem:[#allocation1 + $0x10] sm:$0xff pattern:$0x75316420] }
  0x2f   :  { %198 = vst [vmem:[#allocation1 + $0x10] ss:$2 sm:$0xff] %v1404_v6 }
  0x33   :  { %v152_v22 = vld.sshfl [vmem:[#allocation1 + $0x8] sm:$0xff pattern:$0x75316420]  ;;  %v151_v23 = vld.sshfl [vmem:[#allocation1] sm:$0xff pattern:$0x75316420] }
  0x34   :  { %159 = vrot.lane.b32.xlu1 %v152_v22, %s1357_s2  ;;  %157 = vrot.lane.b32.xlu0 %v151_v23, %s1357_s2  ;;  %176 = vst [vmem:[#allocation1] ss:$2 sm:$0xff] %v1406_v7  ;;  %v1528_v23 = vld [vmem:[#allocation3 + $0x18] sm:$0xff] }
  0x35   :  { %189 = vrot.lane.b32.xlu2 %v181_v21, %s1358_s7 }
  0x36   :  { %v201_v24 = vld.sshfl [vmem:[#allocation1 + $0x10] sm:$0xff pattern:$0x75316420] }
  0x37   :  { %226 = vst [vmem:[#allocation1 + $0x10] ss:$2 sm:$0xff] %v1404_v6 }
  0x3b   :  { %v180_v25 = vld.sshfl [vmem:[#allocation1 + $0x8] sm:$0xff pattern:$0x75316420]  ;;  %v179_v26 = vld.sshfl [vmem:[#allocation1] sm:$0xff pattern:$0x75316420] }
  0x3c   :  { %187 = vrot.lane.b32.xlu1 %v180_v25, %s1358_s7  ;;  %185 = vrot.lane.b32.xlu0 %v179_v26, %s1358_s7  ;;  %196 = vst [vmem:[#allocation1] ss:$2 sm:$0xff] %v1406_v7 }
  0x3d   :  { %209 = vrot.lane.b32.xlu2 %v201_v24, %s1359_s8 }
  0x3e   :  { %v229_v27 = vld.sshfl [vmem:[#allocation1 + $0x10] sm:$0xff pattern:$0x75316420] }
  0x3f   :  { %248 = vst [vmem:[#allocation1 + $0x10] ss:$2 sm:$0xff] %v1404_v6 }
  0x43   :  { %v200_v28 = vld.sshfl [vmem:[#allocation1 + $0x8] sm:$0xff pattern:$0x75316420]  ;;  %v199_v29 = vld.sshfl [vmem:[#allocation1] sm:$0xff pattern:$0x75316420] }
  0x44   :  { %207 = vrot.lane.b32.xlu1 %v200_v28, %s1359_s8  ;;  %205 = vrot.lane.b32.xlu0 %v199_v29, %s1359_s8  ;;  %224 = vst [vmem:[#allocation1] ss:$2 sm:$0xff] %v1406_v7 }
  0x45   :  { %237 = vrot.lane.b32.xlu2 %v229_v27, %s1360_s9 }
  0x46   :  { %v251_v30 = vld.sshfl [vmem:[#allocation1 + $0x10] sm:$0xff pattern:$0x75316420] }
  0x47   :  { %274 = vst [vmem:[#allocation1 + $0x10] ss:$2 sm:$0xff] %v1404_v6 }
  0x4b   :  { %v228_v31 = vld.sshfl [vmem:[#allocation1 + $0x8] sm:$0xff pattern:$0x75316420]  ;;  %v227_v32 = vld.sshfl [vmem:[#allocation1] sm:$0xff pattern:$0x75316420] }
  0x4c   :  { %235 = vrot.lane.b32.xlu1 %v228_v31, %s1360_s9  ;;  %233 = vrot.lane.b32.xlu0 %v227_v32, %s1360_s9  ;;  %246 = vst [vmem:[#allocation1] ss:$2 sm:$0xff] %v1406_v7 }
  0x4d   :  { %259 = vrot.lane.b32.xlu2 %v251_v30, %s1361_s10  ;;  %v668_v30 = vmul.f32 %v1528_v23, %v1412_v9 }
  0x4e   :  { %v277_v35 = vld.sshfl [vmem:[#allocation1 + $0x10] sm:$0xff pattern:$0x75316420] }
  0x4f   :  { %400 = vst [vmem:[#allocation1 + $0x10] ss:$2 sm:$0xff] %v1462_v40 }
  0x53   :  { %v250_v33 = vld.sshfl [vmem:[#allocation1 + $0x8] sm:$0xff pattern:$0x75316420]  ;;  %v249_v34 = vld.sshfl [vmem:[#allocation1] sm:$0xff pattern:$0x75316420] }
  0x54   :  { %257 = vrot.lane.b32.xlu1 %v250_v33, %s1361_s10  ;;  %255 = vrot.lane.b32.xlu0 %v249_v34, %s1361_s10  ;;  %272 = vst [vmem:[#allocation1] ss:$2 sm:$0xff] %v1406_v7 }
  0x55   :  { %285 = vrot.lane.b32.xlu2 %v277_v35, %s1362_s11 }
  0x56   :  { %v403_v43 = vld.sshfl [vmem:[#allocation1 + $0x10] sm:$0xff pattern:$0x75316420] }
  0x57   :  { %425 = vst [vmem:[#allocation1 + $0x10] ss:$2 sm:$0xff] %v1462_v40 }
  0x5b   :  { %v276_v38 = vld.sshfl [vmem:[#allocation1 + $0x8] sm:$0xff pattern:$0x75316420]  ;;  %v275_v39 = vld.sshfl [vmem:[#allocation1] sm:$0xff pattern:$0x75316420] }
  0x5c   :  { %283 = vrot.lane.b32.xlu1 %v276_v38, %s1362_s11  ;;  %281 = vrot.lane.b32.xlu0 %v275_v39, %s1362_s11  ;;  %389 = vst [vmem:[#allocation1] ss:$2 sm:$0xff] %v387_v37  ;;  %v1545_v37 = vld [vmem:[#allocation3 + $0x20] sm:$0xf] }
  0x5d   :  { %411 = vrot.lane.b32.xlu2 %v403_v43, %s1355_s5 }
  0x5e   :  { %v428_v46 = vld.sshfl [vmem:[#allocation1 + $0x10] sm:$0xff pattern:$0x75316420] }
  0x5f   :  { %446 = vst [vmem:[#allocation1 + $0x10] ss:$2 sm:$0xff] %v1462_v40 }
  0x63   :  { %v1465_v41 = vld.sshfl [vmem:[#allocation1] sm:$0xff pattern:$0x75316420]  ;;  %v1467_v42 = vld.sshfl [vmem:[#allocation1 + $0x8] sm:$0xff pattern:$0x75316420] }
  0x64   :  { %398 = vst [vmem:[#allocation1] ss:$2 sm:$0xff] %v1455_v36 }
  0x65   :  { %436 = vrot.lane.b32.xlu2 %v428_v46, %s1356_s6 }
  0x66   :  { %v449_v50 = vld.sshfl [vmem:[#allocation1 + $0x10] sm:$0xff pattern:$0x75316420] }
  0x67   :  { %473 = vst [vmem:[#allocation1 + $0x10] ss:$2 sm:$0xff] %v1462_v40 }
  0x6b   :  { %v402_v44 = vld.sshfl [vmem:[#allocation1 + $0x8] sm:$0xff pattern:$0x75316420]  ;;  %v401_v45 = vld.sshfl [vmem:[#allocation1] sm:$0xff pattern:$0x75316420] }
  0x6c   :  { %409 = vrot.lane.b32.xlu1 %v402_v44, %s1355_s5  ;;  %407 = vrot.lane.b32.xlu0 %v401_v45, %s1355_s5  ;;  %423 = vst [vmem:[#allocation1] ss:$2 sm:$0xff] %v1455_v36 }
  0x6d   :  { %457 = vrot.lane.b32.xlu2 %v449_v50, %s1357_s2 }
  0x6e   :  { %v476_v54 = vld.sshfl [vmem:[#allocation1 + $0x10] sm:$0xff pattern:$0x75316420] }
  0x6f   :  { %v112_v47 = vpop.permute.xlu2 %111  ;;  %492 = vst [vmem:[#allocation1 + $0x10] ss:$2 sm:$0xff] %v1462_v40 }
  0x73   :  { %v427_v48 = vld.sshfl [vmem:[#allocation1 + $0x8] sm:$0xff pattern:$0x75316420]  ;;  %v426_v49 = vld.sshfl [vmem:[#allocation1] sm:$0xff pattern:$0x75316420] }
  0x74   :  { %434 = vrot.lane.b32.xlu1 %v427_v48, %s1356_s6  ;;  %432 = vrot.lane.b32.xlu0 %v426_v49, %s1356_s6  ;;  %444 = vst [vmem:[#allocation1] ss:$2 sm:$0xff] %v1455_v36 }
  0x75   :  { %484 = vrot.lane.b32.xlu2 %v476_v54, %s1358_s7 }
  0x76   :  { %v495_v62 = vld.sshfl [vmem:[#allocation1 + $0x10] sm:$0xff pattern:$0x75316420] }
  0x77   :  { %v1482_v51 = vpop.permute.xlu2 %139  ;;  %519 = vst [vmem:[#allocation1 + $0x10] ss:$2 sm:$0xff] %v1462_v40 }
  0x7b   :  { %v448_v52 = vld.sshfl [vmem:[#allocation1 + $0x8] sm:$0xff pattern:$0x75316420]  ;;  %v447_v53 = vld.sshfl [vmem:[#allocation1] sm:$0xff pattern:$0x75316420] }
  0x7c   :  { %455 = vrot.lane.b32.xlu1 %v448_v52, %s1357_s2  ;;  %453 = vrot.lane.b32.xlu0 %v447_v53, %s1357_s2  ;;  %471 = vst [vmem:[#allocation1] ss:$2 sm:$0xff] %v1455_v36 }
  0x7d   :  { %503 = vrot.lane.b32.xlu2 %v495_v62, %s1359_s8 }
  0x7e   :  { %v522_v3 = vld.sshfl [vmem:[#allocation1 + $0x10] sm:$0xff pattern:$0x75316420] }
  0x7f   :  { %v110_v57 = vpop.permute.xlu2 %109  ;;  %v1499_v63 = vpop.permute.xlu0 %55  ;;  %540 = vst [vmem:[#allocation1 + $0x10] ss:$2 sm:$0xff] %v1462_v40 }
  0x80   :  { %v116_v58 = vsel %vm115_vm1, %v110_v57, %v112_v47  ;;  %v1504_v2 = vpop.permute.xlu1 %65 }
  0x81   :  { %v121_v61 = vrot.slane %v116_v58, 4 }
  0x83   :  { %v475_v59 = vld.sshfl [vmem:[#allocation1 + $0x8] sm:$0xff pattern:$0x75316420]  ;;  %v474_v60 = vld.sshfl [vmem:[#allocation1] sm:$0xff pattern:$0x75316420] }
  0x84   :  { %482 = vrot.lane.b32.xlu1 %v475_v59, %s1358_s7  ;;  %480 = vrot.lane.b32.xlu0 %v474_v60, %s1358_s7  ;;  %490 = vst [vmem:[#allocation1] ss:$2 sm:$0xff] %v1455_v36 }
  0x85   :  { %125 = vst [vmem:[#allocation2] sm:$0xf0] %v121_v61  ;;  %530 = vrot.lane.b32.xlu2 %v522_v3, %s1360_s9 }
  0x86   :  { %v543_v11 = vld.sshfl [vmem:[#allocation1 + $0x10] sm:$0xff pattern:$0x75316420] }
  0x87   :  { %v162_v6 = vpop.permute.xlu2 %161  ;;  %v1511_v10 = vpop.permute.xlu0 %60  ;;  %565 = vst [vmem:[#allocation1 + $0x10] ss:$2 sm:$0xff] %v1462_v40 }
  0x8b   :  { %v494_v0 = vld.sshfl [vmem:[#allocation1 + $0x8] sm:$0xff pattern:$0x75316420]  ;;  %v493_v1 = vld.sshfl [vmem:[#allocation1] sm:$0xff pattern:$0x75316420] }
  0x8c   :  { %501 = vrot.lane.b32.xlu1 %v494_v0, %s1359_s8  ;;  %499 = vrot.lane.b32.xlu0 %v493_v1, %s1359_s8  ;;  %517 = vst [vmem:[#allocation1] ss:$2 sm:$0xff] %v1455_v36  ;;  %v1525_v21 = vld [vmem:[#allocation2] sm:$0xff] }
  0x8d   :  { %551 = vrot.lane.b32.xlu2 %v543_v11, %s1361_s10  ;;  %395 = vst [vmem:[#allocation2] sm:$0xf] %v1467_v42 }
  0x8e   :  { %v568_v22 = vld.sshfl [vmem:[#allocation1 + $0x10] sm:$0xff pattern:$0x75316420] }
  0x8f   :  { %v190_v16 = vpop.permute.xlu2 %189  ;;  %681 = vst [vmem:[#allocation1 + $0x10] ss:$2 sm:$0xff] %v1545_v37 }
  0x93   :  { %v521_v7 = vld.sshfl [vmem:[#allocation1 + $0x8] sm:$0xff pattern:$0x75316420]  ;;  %v520_v8 = vld.sshfl [vmem:[#allocation1] sm:$0xff pattern:$0x75316420] }
  0x94   :  { %528 = vrot.lane.b32.xlu1 %v521_v7, %s1360_s9  ;;  %526 = vrot.lane.b32.xlu0 %v520_v8, %s1360_s9  ;;  %538 = vst [vmem:[#allocation1] ss:$2 sm:$0xff] %v1455_v36 }
  0x95   :  { %576 = vrot.lane.b32.xlu2 %v568_v22, %s1362_s11 }
  0x96   :  { %v108_v12 = vpop.permute.xlu1 %107  ;;  %v684_v49 = vld.sshfl [vmem:[#allocation1 + $0x10] sm:$0xff pattern:$0x75316420] }
  0x97   :  { %v117_v13 = vsel %vm115_vm1, %v108_v12, %v110_v57  ;;  %v210_v32 = vpop.permute.xlu2 %209  ;;  %706 = vst [vmem:[#allocation1 + $0x10] ss:$2 sm:$0xff] %v1545_v37 }
  0x98   :  { %v120_v14 = vrot.slane %v117_v13, 4 }
  0x9a   :  { %124 = vst [vmem:[#allocation2 + $0x30] sm:$0xf0] %v120_v14 }
  0x9b   :  { %v542_v17 = vld.sshfl [vmem:[#allocation1 + $0x8] sm:$0xff pattern:$0x75316420]  ;;  %v541_v18 = vld.sshfl [vmem:[#allocation1] sm:$0xff pattern:$0x75316420] }
  0x9c   :  { %549 = vrot.lane.b32.xlu1 %v542_v17, %s1361_s10  ;;  %547 = vrot.lane.b32.xlu0 %v541_v18, %s1361_s10  ;;  %563 = vst [vmem:[#allocation1] ss:$2 sm:$0xff] %v1455_v36 }
  0x9d   :  { %692 = vrot.lane.b32.xlu2 %v684_v49, %s1355_s5 }
  0x9e   :  { %v138_v24 = vpop.permute.xlu1 %137  ;;  %v136_v25 = vpop.permute.xlu0 %135  ;;  %v709_v57 = vld.sshfl [vmem:[#allocation1 + $0x10] sm:$0xff pattern:$0x75316420] }
  0x9f   :  { %v142_v26 = vsel %vm141_vm2, %v138_v24, %v1482_v51  ;;  %v143_v27 = vsel %vm141_vm2, %v136_v25, %v138_v24  ;;  %v238_v46 = vpop.permute.xlu2 %237  ;;  %727 = vst [vmem:[#allocation1 + $0x10] ss:$2 sm:$0xff] %v1545_v37 }
  0xa0   :  { %v145_v28 = vmul.f32 %v142_v26, %v1520_v19  ;;  %v144_v29 = vmul.f32 %v143_v27, %v1523_v20 }
  0xa1   :  { %v1543_v34 = vld [vmem:[#allocation2 + $0x30] sm:$0xff] }
  0xa2   :  { %147 = vst [vmem:[#allocation2 + $0x10] sm:$0xf] %v145_v28 }
  0xa3   :  { %146 = vst [vmem:[#allocation2 + $0x18] sm:$0xf] %v144_v29  ;;  %v567_v31 = vld.sshfl [vmem:[#allocation1 + $0x8] sm:$0xff pattern:$0x75316420] }
  0xa4   :  { %574 = vrot.lane.b32.xlu1 %v567_v31, %s1362_s11  ;;  %v566_v33 = vld.sshfl [vmem:[#allocation1] sm:$0xff pattern:$0x75316420]  ;;  %394 = vst [vmem:[#allocation2 + $0x30] sm:$0xf] %v1465_v41 }
  0xa5   :  { %670 = vst [vmem:[#allocation1] ss:$2 sm:$0xff] %v668_v30  ;;  %572 = vrot.lane.b32.xlu0 %v566_v33, %s1362_s11  ;;  %717 = vrot.lane.b32.xlu2 %v709_v57, %s1356_s6 }
  0xa6   :  { %v160_v35 = vpop.permute.xlu1 %159  ;;  %v158_v36 = vpop.permute.xlu0 %157  ;;  %v730_v11 = vld.sshfl [vmem:[#allocation1 + $0x10] sm:$0xff pattern:$0x75316420] }
  0xa7   :  { %v164_v38 = vsel %vm163_vm3, %v160_v35, %v162_v6  ;;  %v165_v39 = vsel %vm163_vm3, %v158_v36, %v160_v35  ;;  %v260_v60 = vpop.permute.xlu2 %259  ;;  %754 = vst [vmem:[#allocation1 + $0x10] ss:$2 sm:$0xff] %v1545_v37 }
  0xa8   :  { %v167_v40 = vmul.f32 %v164_v38, %v1402_v5  ;;  %v166_v42 = vmul.f32 %v165_v39, %v1400_v4 }
  0xaa   :  { %v171_v43 = vrot.slane %v167_v40, 4  ;;  %v170_v44 = vrot.slane %v166_v42, 4 }
  0xac   :  { %175 = vst [vmem:[#allocation2 + $0x10] sm:$0xf0] %v171_v43  ;;  %v1556_v45 = vld.sshfl [vmem:[#allocation1] sm:$0xff pattern:$0x75316420] }
  0xad   :  { %174 = vst [vmem:[#allocation2 + $0x18] sm:$0xf0] %v170_v44  ;;  %v1558_v41 = vld.sshfl [vmem:[#allocation1 + $0x8] sm:$0xff pattern:$0x75316420]  ;;  %738 = vrot.lane.b32.xlu2 %v730_v11, %s1357_s2 }
  0xae   :  { %v188_v47 = vpop.permute.xlu1 %187  ;;  %v186_v48 = vpop.permute.xlu0 %185  ;;  %679 = vst [vmem:[#allocation1] ss:$2 sm:$0xff] %v1528_v23  ;;  %v757_v27 = vld.sshfl [vmem:[#allocation1 + $0x10] sm:$0xff pattern:$0x75316420] }
  0xaf   :  { %v192_v50 = vsel %vm191_vm4, %v188_v47, %v190_v16  ;;  %v193_v51 = vsel %vm191_vm4, %v186_v48, %v188_v47  ;;  %v286_v16 = vpop.permute.xlu2 %285  ;;  %773 = vst [vmem:[#allocation1 + $0x10] ss:$2 sm:$0xff] %v1545_v37 }
  0xb0   :  { %195 = vst [vmem:[#allocation2 + $0x28] sm:$0xf] %v192_v50 }
  0xb1   :  { %194 = vst [vmem:[#allocation2 + $0x48] sm:$0xf] %v193_v51 }
  0xb5   :  { %v683_v52 = vld.sshfl [vmem:[#allocation1 + $0x8] sm:$0xff pattern:$0x75316420]  ;;  %v682_v53 = vld.sshfl [vmem:[#allocation1] sm:$0xff pattern:$0x75316420]  ;;  %765 = vrot.lane.b32.xlu2 %v757_v27, %s1358_s7 }
  0xb6   :  { %690 = vrot.lane.b32.xlu1 %v683_v52, %s1355_s5  ;;  %688 = vrot.lane.b32.xlu0 %v682_v53, %s1355_s5  ;;  %704 = vst [vmem:[#allocation1] ss:$2 sm:$0xff] %v1528_v23  ;;  %v208_v54 = vpop.permute.xlu1 %207  ;;  %v206_v55 = vpop.permute.xlu0 %205  ;;  %v776_v39 = vld.sshfl [vmem:[#allocation1 + $0x10] sm:$0xff pattern:$0x75316420]  ;;  %v297_v53 = vld [vmem:[#allocation2 + $0x10] sm:$0xff] }
  0xb7   :  { %v212_v58 = vsel %vm211_vm5, %v208_v54, %v210_v32  ;;  %v213_v59 = vsel %vm211_vm5, %v206_v55, %v208_v54  ;;  %v412_v30 = vpop.permute.xlu2 %411  ;;  %800 = vst [vmem:[#allocation1 + $0x10] ss:$2 sm:$0xff] %v1545_v37 }
  0xb8   :  { %v215_v61 = vmul.f32 %v212_v58, %v1520_v19  ;;  %v214_v62 = vmul.f32 %v213_v59, %v1523_v20 }
  0xba   :  { %v219_v0 = vrot.slane %v215_v61, 4  ;;  %v218_v1 = vrot.slane %v214_v62, 4 }
  0xbc   :  { %223 = vst [vmem:[#allocation2 + $0x28] sm:$0xf0] %v219_v0 }
  0xbd   :  { %222 = vst [vmem:[#allocation2 + $0x48] sm:$0xf0] %v218_v1  ;;  %v708_v3 = vld.sshfl [vmem:[#allocation1 + $0x8] sm:$0xff pattern:$0x75316420]  ;;  %784 = vrot.lane.b32.xlu2 %v776_v39, %s1359_s8 }
  0xbe   :  { %715 = vrot.lane.b32.xlu1 %v708_v3, %s1356_s6  ;;  %v707_v6 = vld.sshfl [vmem:[#allocation1] sm:$0xff pattern:$0x75316420]  ;;  %v236_v7 = vpop.permute.xlu1 %235  ;;  %v234_v8 = vpop.permute.xlu0 %233  ;;  %v803_v47 = vld.sshfl [vmem:[#allocation1 + $0x10] sm:$0xff pattern:$0x75316420] }
  0xbf   :  { %713 = vrot.lane.b32.xlu0 %v707_v6, %s1356_s6  ;;  %725 = vst [vmem:[#allocation1] ss:$2 sm:$0xff] %v1528_v23  ;;  %v240_v12 = vsel %vm239_vm6, %v236_v7, %v238_v46  ;;  %v241_v13 = vsel %vm239_vm6, %v234_v8, %v236_v7  ;;  %v437_v43 = vpop.permute.xlu2 %436  ;;  %v1632_v6 = vld [vmem:[%s2003_s1] sm:$0xff] }
  0xc0   :  { %v243_v14 = vmul.f32 %v240_v12, %v1402_v5  ;;  %v242_v15 = vmul.f32 %v241_v13, %v1400_v4  ;;  %821 = vst [vmem:[#allocation1 + $0x10] ss:$2 sm:$0xff] %v1545_v37  ;;  %v296_v7 = vld [vmem:[#allocation2 + $0x18] sm:$0xff] }
  0xc1   :  { %v1642_v8 = vld [vmem:[#allocation3 + $0x2c] sm:$0xf] }
  0xc2   :  { %245 = vst [vmem:[#allocation2 + $0x20] sm:$0xf] %v243_v14 }
  0xc3   :  { %244 = vst [vmem:[#allocation2 + $0x8] sm:$0xf] %v242_v15  ;;  %v299_v52 = vld [vmem:[#allocation2 + $0x28] sm:$0xff] }
  0xc4   :  { %v298_v61 = vld [vmem:[#allocation2 + $0x48] sm:$0xff] }
  0xc5   :  { %811 = vrot.lane.b32.xlu2 %v803_v47, %s1360_s9 }
  0xc6   :  { %v729_v17 = vld.sshfl [vmem:[#allocation1 + $0x8] sm:$0xff pattern:$0x75316420]  ;;  %v728_v18 = vld.sshfl [vmem:[#allocation1] sm:$0xff pattern:$0x75316420]  ;;  %v258_v22 = vpop.permute.xlu1 %257  ;;  %v256_v24 = vpop.permute.xlu0 %255 }
  0xc7   :  { %736 = vrot.lane.b32.xlu1 %v729_v17, %s1357_s2  ;;  %734 = vrot.lane.b32.xlu0 %v728_v18, %s1357_s2  ;;  %752 = vst [vmem:[#allocation1] ss:$2 sm:$0xff] %v1528_v23  ;;  %v262_v25 = vsel %vm261_vm7, %v258_v22, %v260_v60  ;;  %v263_v26 = vsel %vm261_vm7, %v256_v24, %v258_v22  ;;  %v1620_v54 = vpop.permute.xlu2 %457  ;;  %v824_v0 = vld.sshfl [vmem:[#allocation1 + $0x10] sm:$0xff pattern:$0x75316420]  ;;  %v1658_v22 = vld [vmem:[%s2003_s1 + $0x8] sm:$0xff] }
  0xc8   :  { %v267_v28 = vrot.slane %v262_v25, 4  ;;  %v266_v29 = vrot.slane %v263_v26, 4  ;;  %846 = vst [vmem:[#allocation1 + $0x10] ss:$2 sm:$0xff] %v1545_v37 }
  0xca   :  { %271 = vst [vmem:[#allocation2 + $0x20] sm:$0xf0] %v267_v28 }
  0xcb   :  { %270 = vst [vmem:[#allocation2 + $0x8] sm:$0xf0] %v266_v29 }
  0xcd   :  { %832 = vrot.lane.b32.xlu2 %v824_v0, %s1361_s10 }
  0xce   :  { %v756_v31 = vld.sshfl [vmem:[#allocation1 + $0x8] sm:$0xff pattern:$0x75316420]  ;;  %v755_v32 = vld.sshfl [vmem:[#allocation1] sm:$0xff pattern:$0x75316420]  ;;  %v284_v33 = vpop.permute.xlu1 %283  ;;  %v282_v35 = vpop.permute.xlu0 %281 }
  0xcf   :  { %763 = vrot.lane.b32.xlu1 %v756_v31, %s1358_s7  ;;  %761 = vrot.lane.b32.xlu0 %v755_v32, %s1358_s7  ;;  %771 = vst [vmem:[#allocation1] ss:$2 sm:$0xff] %v1528_v23  ;;  %v288_v36 = vsel %vm287_vm8, %v284_v33, %v286_v16  ;;  %v289_v38 = vsel %vm287_vm8, %v282_v35, %v284_v33  ;;  %v485_v14 = vpop.permute.xlu2 %484  ;;  %v849_v15 = vld.sshfl [vmem:[#allocation1 + $0x10] sm:$0xff pattern:$0x75316420]  ;;  %v1651_v16 = vld [vmem:[#allocation3 + $0x24] sm:$0xff] }
  0xd0   :  { %v291_v40 = vmul.f32 %v288_v36, %v1520_v19  ;;  %v290_v42 = vmul.f32 %v289_v38, %v1523_v20  ;;  %962 = vst [vmem:[#allocation1 + $0x10] ss:$2 sm:$0xff] %v1642_v8  ;;  %v1688_v32 = vld [vmem:[%s2003_s1 + $0x10] sm:$0x1] }
  0xd1   :  { %v301_v49 = vld [vmem:[#allocation2 + $0x20] sm:$0xff] }
  0xd2   :  { %293 = vst [vmem:[#allocation2 + $0x38] sm:$0xf] %v291_v40  ;;  %v300_v51 = vld [vmem:[#allocation2 + $0x8] sm:$0xff] }
  0xd3   :  { %292 = vst [vmem:[#allocation2 + $0x40] sm:$0xf] %v290_v42 }
  0xd5   :  { %857 = vrot.lane.b32.xlu2 %v849_v15, %s1362_s11 }
  0xd6   :  { %v775_v44 = vld.sshfl [vmem:[#allocation1 + $0x8] sm:$0xff pattern:$0x75316420]  ;;  %v774_v46 = vld.sshfl [vmem:[#allocation1] sm:$0xff pattern:$0x75316420] }
  0xd7   :  { %782 = vrot.lane.b32.xlu1 %v775_v44, %s1359_s8  ;;  %780 = vrot.lane.b32.xlu0 %v774_v46, %s1359_s8  ;;  %798 = vst [vmem:[#allocation1] ss:$2 sm:$0xff] %v1528_v23  ;;  %v504_v33 = vpop.permute.xlu2 %503 }
  0xd9   :  { %v303_v48 = vld [vmem:[#allocation2 + $0x38] sm:$0xf] }
  0xda   :  { %v302_v50 = vld [vmem:[#allocation2 + $0x40] sm:$0xf]  ;;  %1237 = vmatpush.msk.msra.mxu1 %vm84_vm0, %v303_v48 }
  0xdb   :  { %1233 = vmatpush.msk.msra.mxu0 %vm84_vm0, %v302_v50 }
  0xdc   :  { %358 = vmatpush.msra.mxu1 %v301_v49 }
  0xdd   :  { %332 = vmatpush.msra.mxu0 %v300_v51 }
  0xde   :  { %v802_v55 = vld.sshfl [vmem:[#allocation1 + $0x8] sm:$0xff pattern:$0x75316420]  ;;  %v801_v57 = vld.sshfl [vmem:[#allocation1] sm:$0xff pattern:$0x75316420]  ;;  %359 = vmatpush.msra.mxu1 %v299_v52  ;;  %v410_v58 = vpop.permute.xlu1 %409  ;;  %v408_v59 = vpop.permute.xlu0 %407 }
  0xdf   :  { %809 = vrot.lane.b32.xlu1 %v802_v55, %s1360_s9  ;;  %807 = vrot.lane.b32.xlu0 %v801_v57, %s1360_s9  ;;  %819 = vst [vmem:[#allocation1] ss:$2 sm:$0xff] %v1528_v23  ;;  %v413_v60 = vsel %vm115_vm1, %v410_v58, %v412_v30  ;;  %v414_v62 = vsel %vm115_vm1, %v408_v59, %v410_v58  ;;  %v1681_v30 = vld.sshfl [vmem:[#allocation1 + $0x10] sm:$0xff pattern:$0x75316420]  ;;  %v531_v46 = vpop.permute.xlu2 %530 }
  0xe0   :  { %v418_v1 = vrot.slane %v413_v60, 4  ;;  %333 = vmatpush.msra.mxu0 %v298_v61  ;;  %v417_v3 = vrot.slane %v414_v62, 4  ;;  %360 = vmatpush.msra.mxu1 %v297_v53  ;;  %987 = vst [vmem:[#allocation1 + $0x10] ss:$2 sm:$0xff] %v1642_v8 }
  0xe2   :  { %422 = vst [vmem:[#allocation2] sm:$0xf0] %v418_v1  ;;  %334 = vmatpush.msra.mxu0 %v296_v7  ;;  %361 = vmatpush.msra.mxu1 %v1525_v21 }
  0xe3   :  { %421 = vst [vmem:[#allocation2 + $0x30] sm:$0xf0] %v417_v3  ;;  %1238 = vmatmul.msk.f32.vlgmr.msra.gmra.mxu1 %vm304_vm9, %v1632_v6 }
  0xe4   :  { %335 = vmatpush.msra.mxu0 %v1543_v34 }
  0xe5   :  { %1234 = vmatmul.msk.f32.vlgmr.msra.gmra.mxu0 %vm304_vm9, %v1632_v6 }
  0xe6   :  { %v823_v11 = vld.sshfl [vmem:[#allocation1 + $0x8] sm:$0xff pattern:$0x75316420]  ;;  %v822_v37 = vld.sshfl [vmem:[#allocation1] sm:$0xff pattern:$0x75316420]  ;;  %v435_v12 = vpop.permute.xlu1 %434  ;;  %v433_v13 = vpop.permute.xlu0 %432 }
  0xe7   :  { %830 = vrot.lane.b32.xlu1 %v823_v11, %s1361_s10  ;;  %828 = vrot.lane.b32.xlu0 %v822_v37, %s1361_s10  ;;  %844 = vst [vmem:[#allocation1] ss:$2 sm:$0xff] %v1528_v23  ;;  %v438_v21 = vsel %vm141_vm2, %v435_v12, %v437_v43  ;;  %v439_v34 = vsel %vm141_vm2, %v433_v13, %v435_v12  ;;  %v990_v47 = vld.sshfl [vmem:[#allocation1 + $0x10] sm:$0xff pattern:$0x75316420]  ;;  %v552_v60 = vpop.permute.xlu2 %551 }
  0xe8   :  { %v441_v17 = vmul.f32 %v438_v21, %v1520_v19  ;;  %v440_v18 = vmul.f32 %v439_v34, %v1523_v20  ;;  %v949_v23 = vmul.f32 %v1651_v16, %v1412_v9  ;;  %998 = vrot.lane.b32.xlu2 %v990_v47, %s1356_s6  ;;  %1008 = vst [vmem:[#allocation1 + $0x10] ss:$2 sm:$0xff] %v1642_v8 }
  0xe9   :  { %v1669_v25 = vld [vmem:[#allocation2] sm:$0xff] }
  0xea   :  { %443 = vst [vmem:[#allocation2 + $0x10] sm:$0xf] %v441_v17  ;;  %v1666_v24 = vld [vmem:[#allocation2 + $0x30] sm:$0xff] }
  0xeb   :  { %442 = vst [vmem:[#allocation2 + $0x18] sm:$0xf] %v440_v18  ;;  %1239 = vmatmul.msk.f32.gmra.mxu1 %vm304_vm9, %v1658_v22 }
  0xec   :  { %675 = vst [vmem:[#allocation2 + $0x30] sm:$0xf] %v1556_v45 }
  0xed   :  { %1235 = vmatmul.msk.f32.gmra.mxu0 %vm304_vm9, %v1658_v22  ;;  %676 = vst [vmem:[#allocation2] sm:$0xf] %v1558_v41 }
  0xee   :  { %v848_v26 = vld.sshfl [vmem:[#allocation1 + $0x8] sm:$0xff pattern:$0x75316420]  ;;  %v847_v27 = vld.sshfl [vmem:[#allocation1] sm:$0xff pattern:$0x75316420]  ;;  %v456_v28 = vpop.permute.xlu1 %455  ;;  %v454_v29 = vpop.permute.xlu0 %453 }
  0xef   :  { %855 = vrot.lane.b32.xlu1 %v848_v26, %s1362_s11  ;;  %951 = vst [vmem:[#allocation1] ss:$2 sm:$0xff] %v949_v23  ;;  %853 = vrot.lane.b32.xlu0 %v847_v27, %s1362_s11  ;;  %v459_v9 = vsel %vm163_vm3, %v456_v28, %v1620_v54  ;;  %v460_v45 = vsel %vm163_vm3, %v454_v29, %v456_v28  ;;  %v1011_v59 = vld.sshfl [vmem:[#allocation1 + $0x10] sm:$0xff pattern:$0x75316420]  ;;  %v577_v26 = vpop.permute.xlu2 %576 }
  0xf0   :  { %v462_v41 = vmul.f32 %v459_v9, %v1402_v5  ;;  %v461_v31 = vmul.f32 %v460_v45, %v1400_v4  ;;  %1019 = vrot.lane.b32.xlu2 %v1011_v59, %s1357_s2  ;;  %1035 = vst [vmem:[#allocation1 + $0x10] ss:$2 sm:$0xff] %v1642_v8 }
  0xf2   :  { %v466_v35 = vrot.slane %v462_v41, 4  ;;  %v465_v36 = vrot.slane %v461_v31, 4 }
  0xf3   :  { %1240 = vmatmul.msk.f32.gmra.mxu1 %vm304_vm9, %v1688_v32 }
  0xf4   :  { %470 = vst [vmem:[#allocation2 + $0x10] sm:$0xf0] %v466_v35 }
  0xf5   :  { %469 = vst [vmem:[#allocation2 + $0x18] sm:$0xf0] %v465_v36  ;;  %1236 = vmatmul.msk.f32.gmra.mxu0 %vm304_vm9, %v1688_v32 }
  0xf6   :  { %v1695_v38 = vld.sshfl [vmem:[#allocation1] sm:$0xff pattern:$0x75316420]  ;;  %v1697_v39 = vld.sshfl [vmem:[#allocation1 + $0x8] sm:$0xff pattern:$0x75316420]  ;;  %v483_v40 = vpop.permute.xlu1 %482  ;;  %v481_v42 = vpop.permute.xlu0 %480 }
  0xf7   :  { %960 = vst [vmem:[#allocation1] ss:$2 sm:$0xff] %v1651_v16  ;;  %v486_v43 = vsel %vm191_vm4, %v483_v40, %v485_v14  ;;  %v487_v44 = vsel %vm191_vm4, %v481_v42, %v483_v40  ;;  %v1038_v17 = vld.sshfl [vmem:[#allocation1 + $0x10] sm:$0xff pattern:$0x75316420]  ;;  %v693_v35 = vpop.permute.xlu2 %692 }
  0xf8   :  { %489 = vst [vmem:[#allocation2 + $0x28] sm:$0xf] %v486_v43  ;;  %1046 = vrot.lane.b32.xlu2 %v1038_v17, %s1358_s7 }
  0xf9   :  { %488 = vst [vmem:[#allocation2 + $0x48] sm:$0xf] %v487_v44 }
  0xfa   :  { %1054 = vst [vmem:[#allocation1 + $0x10] ss:$2 sm:$0xff] %v1642_v8 }
  0xfe   :  { %v502_v48 = vpop.permute.xlu1 %501  ;;  %v500_v49 = vpop.permute.xlu0 %499  ;;  %v1706_v50 = vld.sshfl [vmem:[#allocation1] sm:$0xff pattern:$0x75316420]  ;;  %v1708_v51 = vld.sshfl [vmem:[#allocation1 + $0x8] sm:$0xff pattern:$0x75316420] }
  0xff   :  { %v505_v52 = vsel %vm211_vm5, %v502_v48, %v504_v33  ;;  %v506_v53 = vsel %vm211_vm5, %v500_v49, %v502_v48  ;;  %985 = vst [vmem:[#allocation1] ss:$2 sm:$0xff] %v1651_v16  ;;  %v718_v49 = vpop.permute.xlu2 %717 }
 0x100   :  { %v508_v54 = vmul.f32 %v505_v52, %v1520_v19  ;;  %v507_v55 = vmul.f32 %v506_v53, %v1523_v20  ;;  %v587_v53 = vld [vmem:[#allocation2 + $0x10] sm:$0xff] }
 0x101   :  { %v1057_v41 = vld.sshfl [vmem:[#allocation1 + $0x10] sm:$0xff pattern:$0x75316420] }
 0x102   :  { %v512_v57 = vrot.slane %v508_v54, 4  ;;  %v511_v58 = vrot.slane %v507_v55, 4  ;;  %1065 = vrot.lane.b32.xlu2 %v1057_v41, %s1359_s8  ;;  %1081 = vst [vmem:[#allocation1 + $0x10] ss:$2 sm:$0xff] %v1642_v8 }
 0x104   :  { %516 = vst [vmem:[#allocation2 + $0x28] sm:$0xf0] %v512_v57 }
 0x105   :  { %515 = vst [vmem:[#allocation2 + $0x48] sm:$0xf0] %v511_v58 }
 0x106   :  { %v989_v61 = vld.sshfl [vmem:[#allocation1 + $0x8] sm:$0xff pattern:$0x75316420]  ;;  %v988_v62 = vld.sshfl [vmem:[#allocation1] sm:$0xff pattern:$0x75316420]  ;;  %v529_v0 = vpop.permute.xlu1 %528  ;;  %v527_v1 = vpop.permute.xlu0 %526 }
 0x107   :  { %996 = vrot.lane.b32.xlu1 %v989_v61, %s1356_s6  ;;  %994 = vrot.lane.b32.xlu0 %v988_v62, %s1356_s6  ;;  %1006 = vst [vmem:[#allocation1] ss:$2 sm:$0xff] %v1651_v16  ;;  %v532_v3 = vsel %vm239_vm6, %v529_v0, %v531_v46  ;;  %v533_v7 = vsel %vm239_vm6, %v527_v1, %v529_v0  ;;  %v586_v0 = vld [vmem:[#allocation2 + $0x18] sm:$0xff] }
 0x108   :  { %v535_v11 = vmul.f32 %v532_v3, %v1402_v5  ;;  %v534_v37 = vmul.f32 %v533_v7, %v1400_v4 }
 0x109   :  { %v1084_v43 = vld.sshfl [vmem:[#allocation1 + $0x10] sm:$0xff pattern:$0x75316420] }
 0x10a   :  { %537 = vst [vmem:[#allocation2 + $0x20] sm:$0xf] %v535_v11  ;;  %1092 = vrot.lane.b32.xlu2 %v1084_v43, %s1360_s9 }
 0x10b   :  { %536 = vst [vmem:[#allocation2 + $0x8] sm:$0xf] %v534_v37  ;;  %v589_v52 = vld [vmem:[#allocation2 + $0x28] sm:$0xff] }
 0x10c   :  { %1102 = vst [vmem:[#allocation1 + $0x10] ss:$2 sm:$0xff] %v1642_v8  ;;  %v588_v57 = vld [vmem:[#allocation2 + $0x48] sm:$0xff] }
 0x10e   :  { %v1010_v12 = vld.sshfl [vmem:[#allocation1 + $0x8] sm:$0xff pattern:$0x75316420]  ;;  %v1009_v13 = vld.sshfl [vmem:[#allocation1] sm:$0xff pattern:$0x75316420]  ;;  %v550_v21 = vpop.permute.xlu1 %549  ;;  %v548_v34 = vpop.permute.xlu0 %547 }
 0x10f   :  { %1017 = vrot.lane.b32.xlu1 %v1010_v12, %s1357_s2  ;;  %1015 = vrot.lane.b32.xlu0 %v1009_v13, %s1357_s2  ;;  %1033 = vst [vmem:[#allocation1] ss:$2 sm:$0xff] %v1651_v16  ;;  %v553_v14 = vsel %vm261_vm7, %v550_v21, %v552_v60  ;;  %v554_v15 = vsel %vm261_vm7, %v548_v34, %v550_v21 }
 0x110   :  { %v558_v18 = vrot.slane %v553_v14, 4  ;;  %v557_v23 = vrot.slane %v554_v15, 4 }
 0x112   :  { %562 = vst [vmem:[#allocation2 + $0x20] sm:$0xf0] %v558_v18 }
 0x113   :  { %561 = vst [vmem:[#allocation2 + $0x8] sm:$0xf0] %v557_v23  ;;  %v1105_v58 = vld.sshfl [vmem:[#allocation1 + $0x10] sm:$0xff pattern:$0x75316420] }
 0x114   :  { %1127 = vst [vmem:[#allocation1 + $0x10] ss:$2 sm:$0xff] %v1642_v8  ;;  %1113 = vrot.lane.b32.xlu2 %v1105_v58, %s1361_s10  ;;  %v739_v8 = vpop.permute.xlu2 %738 }
 0x116   :  { %v1037_v27 = vld.sshfl [vmem:[#allocation1 + $0x8] sm:$0xff pattern:$0x75316420]  ;;  %v1036_v28 = vld.sshfl [vmem:[#allocation1] sm:$0xff pattern:$0x75316420]  ;;  %v575_v29 = vpop.permute.xlu1 %574 }
 0x117   :  { %1044 = vrot.lane.b32.xlu1 %v1037_v27, %s1358_s7  ;;  %1042 = vrot.lane.b32.xlu0 %v1036_v28, %s1358_s7  ;;  %1052 = vst [vmem:[#allocation1] ss:$2 sm:$0xff] %v1651_v16  ;;  %v578_v9 = vsel %vm287_vm8, %v575_v29, %v577_v26  ;;  %v573_v45 = vpop.permute.xlu0 %572 }
 0x118   :  { %v581_v31 = vmul.f32 %v578_v9, %v1520_v19  ;;  %v579_v33 = vsel %vm287_vm8, %v573_v45, %v575_v29 }
 0x119   :  { %v580_v36 = vmul.f32 %v579_v33, %v1523_v20  ;;  %v591_v46 = vld [vmem:[#allocation2 + $0x20] sm:$0xff] }
 0x11a   :  { %583 = vst [vmem:[#allocation2 + $0x38] sm:$0xf] %v581_v31  ;;  %v590_v48 = vld [vmem:[#allocation2 + $0x8] sm:$0xff] }
 0x11b   :  { %582 = vst [vmem:[#allocation2 + $0x40] sm:$0xf] %v580_v36 }
 0x11c   :  { %v766_v17 = vpop.permute.xlu2 %765 }
 0x11e   :  { %v1056_v40 = vld.sshfl [vmem:[#allocation1 + $0x8] sm:$0xff pattern:$0x75316420]  ;;  %v1055_v42 = vld.sshfl [vmem:[#allocation1] sm:$0xff pattern:$0x75316420] }
 0x11f   :  { %1063 = vrot.lane.b32.xlu1 %v1056_v40, %s1359_s8  ;;  %1061 = vrot.lane.b32.xlu0 %v1055_v42, %s1359_s8  ;;  %1079 = vst [vmem:[#allocation1] ss:$2 sm:$0xff] %v1651_v16 }
 0x121   :  { %v593_v44 = vld [vmem:[#allocation2 + $0x38] sm:$0xf] }
 0x122   :  { %v592_v47 = vld [vmem:[#allocation2 + $0x40] sm:$0xf]  ;;  %1245 = vmatpush.msk.msra.mxu3 %vm84_vm0, %v593_v44 }
 0x123   :  { %1241 = vmatpush.msk.msra.mxu2 %vm84_vm0, %v592_v47 }
 0x124   :  { %638 = vmatpush.msra.mxu3 %v591_v46 }
 0x125   :  { %612 = vmatpush.msra.mxu2 %v590_v48 }
 0x126   :  { %v1083_v54 = vld.sshfl [vmem:[#allocation1 + $0x8] sm:$0xff pattern:$0x75316420]  ;;  %v1082_v55 = vld.sshfl [vmem:[#allocation1] sm:$0xff pattern:$0x75316420]  ;;  %639 = vmatpush.msra.mxu3 %v589_v52 }
 0x127   :  { %1090 = vrot.lane.b32.xlu1 %v1083_v54, %s1360_s9  ;;  %1088 = vrot.lane.b32.xlu0 %v1082_v55, %s1360_s9  ;;  %1100 = vst [vmem:[#allocation1] ss:$2 sm:$0xff] %v1651_v16 }
 0x128   :  { %v691_v59 = vpop.permute.xlu1 %690  ;;  %613 = vmatpush.msra.mxu2 %v588_v57  ;;  %v689_v60 = vpop.permute.xlu0 %688  ;;  %640 = vmatpush.msra.mxu3 %v587_v53 }
 0x129   :  { %v694_v61 = vsel %vm115_vm1, %v691_v59, %v693_v35  ;;  %v695_v62 = vsel %vm115_vm1, %v689_v60, %v691_v59 }
 0x12a   :  { %v699_v1 = vrot.slane %v694_v61, 4  ;;  %v698_v3 = vrot.slane %v695_v62, 4  ;;  %614 = vmatpush.msra.mxu2 %v586_v0  ;;  %641 = vmatpush.msra.mxu3 %v1669_v25  ;;  %v1130_v25 = vld.sshfl [vmem:[#allocation1 + $0x10] sm:$0xff pattern:$0x75316420] }
 0x12b   :  { %1246 = vmatmul.msk.f32.vlgmr.msra.gmra.mxu3 %vm304_vm9, %v1632_v6  ;;  %1138 = vrot.lane.b32.xlu2 %v1130_v25, %s1362_s11 }
 0x12c   :  { %615 = vmatpush.msra.mxu2 %v1666_v24  ;;  %702 = vst [vmem:[#allocation2 + $0x30] sm:$0xf0] %v698_v3 }
 0x12d   :  { %703 = vst [vmem:[#allocation2] sm:$0xf0] %v699_v1  ;;  %1242 = vmatmul.msk.f32.vlgmr.msra.gmra.mxu2 %vm304_vm9, %v1632_v6 }
 0x12e   :  { %v1104_v7 = vld.sshfl [vmem:[#allocation1 + $0x8] sm:$0xff pattern:$0x75316420]  ;;  %v1103_v11 = vld.sshfl [vmem:[#allocation1] sm:$0xff pattern:$0x75316420] }
 0x12f   :  { %1111 = vrot.lane.b32.xlu1 %v1104_v7, %s1361_s10  ;;  %1109 = vrot.lane.b32.xlu0 %v1103_v11, %s1361_s10  ;;  %1125 = vst [vmem:[#allocation1] ss:$2 sm:$0xff] %v1651_v16 }
 0x130   :  { %v716_v37 = vpop.permute.xlu1 %715 }
 0x131   :  { %v719_v12 = vsel %vm141_vm2, %v716_v37, %v718_v49  ;;  %v714_v24 = vpop.permute.xlu0 %713 }
 0x132   :  { %v722_v13 = vmul.f32 %v719_v12, %v1520_v19  ;;  %v720_v21 = vsel %vm141_vm2, %v714_v24, %v716_v37 }
 0x133   :  { %v721_v34 = vmul.f32 %v720_v21, %v1523_v20  ;;  %1247 = vmatmul.msk.f32.gmra.mxu3 %vm304_vm9, %v1658_v22  ;;  %v1784_v16 = vld [vmem:[#allocation2 + $0x30] sm:$0xff]  ;;  %973 = vrot.lane.b32.xlu2 %v1681_v30, %s1355_s5  ;;  %v785_v30 = vpop.permute.xlu2 %784 }
 0x134   :  { %724 = vst [vmem:[#allocation2 + $0x10] sm:$0xf] %v722_v13  ;;  %v1789_v18 = vld [vmem:[#allocation2] sm:$0xff] }
 0x135   :  { %723 = vst [vmem:[#allocation2 + $0x18] sm:$0xf] %v721_v34  ;;  %1243 = vmatmul.msk.f32.gmra.mxu2 %vm304_vm9, %v1658_v22 }
 0x136   :  { %v1129_v14 = vld.sshfl [vmem:[#allocation1 + $0x8] sm:$0xff pattern:$0x75316420]  ;;  %v1128_v15 = vld.sshfl [vmem:[#allocation1] sm:$0xff pattern:$0x75316420] }
 0x137   :  { %1136 = vrot.lane.b32.xlu1 %v1129_v14, %s1362_s11  ;;  %1134 = vrot.lane.b32.xlu0 %v1128_v15, %s1362_s11  ;;  %956 = vst [vmem:[#allocation2 + $0x30] sm:$0xf] %v1695_v38 }
 0x138   :  { %957 = vst [vmem:[#allocation2] sm:$0xf] %v1697_v39 }
 0x139   :  { %v737_v23 = vpop.permute.xlu1 %736  ;;  %v735_v26 = vpop.permute.xlu0 %734 }
 0x13a   :  { %v740_v27 = vsel %vm163_vm3, %v737_v23, %v739_v8  ;;  %v741_v28 = vsel %vm163_vm3, %v735_v26, %v737_v23 }
 0x13b   :  { %v743_v29 = vmul.f32 %v740_v27, %v1402_v5  ;;  %v742_v9 = vmul.f32 %v741_v28, %v1400_v4  ;;  %1248 = vmatmul.msk.f32.gmra.mxu3 %vm304_vm9, %v1688_v32  ;;  %v812_v43 = vpop.permute.xlu2 %811 }
 0x13d   :  { %v747_v38 = vrot.slane %v743_v29, 4  ;;  %v746_v39 = vrot.slane %v742_v9, 4  ;;  %1244 = vmatmul.msk.f32.gmra.mxu2 %vm304_vm9, %v1688_v32 }
 0x13f   :  { %751 = vst [vmem:[#allocation2 + $0x10] sm:$0xf0] %v747_v38  ;;  %971 = vrot.lane.b32.xlu1 %v1708_v51, %s1355_s5  ;;  %969 = vrot.lane.b32.xlu0 %v1706_v50, %s1355_s5 }
 0x140   :  { %750 = vst [vmem:[#allocation2 + $0x18] sm:$0xf0] %v746_v39 }
 0x141   :  { %v764_v45 = vpop.permute.xlu1 %763  ;;  %v762_v41 = vpop.permute.xlu0 %761 }
 0x142   :  { %v767_v31 = vsel %vm191_vm4, %v764_v45, %v766_v17  ;;  %v768_v33 = vsel %vm191_vm4, %v762_v41, %v764_v45 }
 0x143   :  { %770 = vst [vmem:[#allocation2 + $0x28] sm:$0xf] %v767_v31  ;;  %v833_v55 = vpop.permute.xlu2 %832 }
 0x144   :  { %769 = vst [vmem:[#allocation2 + $0x48] sm:$0xf] %v768_v33 }
 0x149   :  { %v783_v35 = vpop.permute.xlu1 %782  ;;  %v781_v36 = vpop.permute.xlu0 %780 }
 0x14a   :  { %v786_v51 = vsel %vm211_vm5, %v783_v35, %v785_v30  ;;  %v787_v50 = vsel %vm211_vm5, %v781_v36, %v783_v35  ;;  %v868_v35 = vld [vmem:[#allocation2 + $0x10] sm:$0xff] }
 0x14b   :  { %v789_v40 = vmul.f32 %v786_v51, %v1520_v19  ;;  %v788_v42 = vmul.f32 %v787_v50, %v1523_v20  ;;  %v858_v0 = vpop.permute.xlu2 %857 }
 0x14d   :  { %v793_v44 = vrot.slane %v789_v40, 4  ;;  %v792_v46 = vrot.slane %v788_v42, 4  ;;  %v867_v40 = vld [vmem:[#allocation2 + $0x18] sm:$0xff] }
 0x14f   :  { %797 = vst [vmem:[#allocation2 + $0x28] sm:$0xf0] %v793_v44 }
 0x150   :  { %796 = vst [vmem:[#allocation2 + $0x48] sm:$0xf0] %v792_v46 }
 0x151   :  { %v810_v47 = vpop.permute.xlu1 %809  ;;  %v808_v48 = vpop.permute.xlu0 %807 }
 0x152   :  { %v813_v49 = vsel %vm239_vm6, %v810_v47, %v812_v43  ;;  %v814_v52 = vsel %vm239_vm6, %v808_v48, %v810_v47 }
 0x153   :  { %v816_v53 = vmul.f32 %v813_v49, %v1402_v5  ;;  %v815_v54 = vmul.f32 %v814_v52, %v1400_v4  ;;  %v999_v15 = vpop.permute.xlu2 %998 }
 0x155   :  { %818 = vst [vmem:[#allocation2 + $0x20] sm:$0xf] %v816_v53 }
 0x156   :  { %817 = vst [vmem:[#allocation2 + $0x8] sm:$0xf] %v815_v54  ;;  %v870_v30 = vld [vmem:[#allocation2 + $0x28] sm:$0xff] }
 0x157   :  { %v869_v41 = vld [vmem:[#allocation2 + $0x48] sm:$0xff] }
 0x159   :  { %v831_v57 = vpop.permute.xlu1 %830  ;;  %v829_v58 = vpop.permute.xlu0 %828 }
 0x15a   :  { %v834_v59 = vsel %vm261_vm7, %v831_v57, %v833_v55  ;;  %v835_v60 = vsel %vm261_vm7, %v829_v58, %v831_v57 }
 0x15b   :  { %v839_v61 = vrot.slane %v834_v59, 4  ;;  %v838_v62 = vrot.slane %v835_v60, 4  ;;  %v1020_v36 = vpop.permute.xlu2 %1019 }
 0x15d   :  { %843 = vst [vmem:[#allocation2 + $0x20] sm:$0xf0] %v839_v61 }
 0x15e   :  { %842 = vst [vmem:[#allocation2 + $0x8] sm:$0xf0] %v838_v62 }
 0x160   :  { %v363_v1 = vpop.f32.mrf.mxu1 }
 0x161   :  { %v856_v3 = vpop.permute.xlu1 %855  ;;  %v854_v8 = vpop.permute.xlu0 %853  ;;  %v364_v7 = vadd.f32 %v363_v1, %v1499_v63 }
 0x162   :  { %v859_v11 = vsel %vm287_vm8, %v856_v3, %v858_v0  ;;  %v860_v25 = vsel %vm287_vm8, %v854_v8, %v856_v3  ;;  %v337_v37 = vpop.f32.mrf.mxu0 }
 0x163   :  { %v862_v12 = vmul.f32 %v859_v11, %v1520_v19  ;;  %v861_v24 = vmul.f32 %v860_v25, %v1523_v20  ;;  %v338_v13 = vadd.f32 %v337_v37, %v1499_v63  ;;  %v373_v21 = vmax.f32 %v364_v7, 0.0  ;;  %v1047_v48 = vpop.permute.xlu2 %1046 }
 0x164   :  { %v872_v38 = vld [vmem:[#allocation2 + $0x20] sm:$0xff] }
 0x165   :  { %864 = vst [vmem:[#allocation2 + $0x38] sm:$0xf] %v862_v12  ;;  %v372_v34 = vmax.f32 %v338_v13, 0.0  ;;  %v871_v39 = vld [vmem:[#allocation2 + $0x8] sm:$0xff] }
 0x166   :  { %863 = vst [vmem:[#allocation2 + $0x40] sm:$0xf] %v861_v24 }
 0x167   :  { %378 = vst [vmem:[%s2006_s4] sm:$0xff] %v372_v34 }
 0x168   :  { %379 = vst [vmem:[%s2006_s4 + $0x8] sm:$0xff] %v373_v21  ;;  %v366_v14 = vpop.f32.mrf.mxu1 }
 0x169   :  { %v367_v17 = vadd.f32 %v366_v14, %v1511_v10 }
 0x16a   :  { %v340_v23 = vpop.f32.mrf.mxu0 }
 0x16b   :  { %v341_v26 = vadd.f32 %v340_v23, %v1511_v10  ;;  %v375_v27 = vmax.f32 %v367_v17, 0.0  ;;  %v1066_v60 = vpop.permute.xlu2 %1065 }
 0x16c   :  { %v874_v28 = vld [vmem:[#allocation2 + $0x38] sm:$0xf] }
 0x16d   :  { %v374_v29 = vmax.f32 %v341_v26, 0.0  ;;  %381 = vst [vmem:[%s2006_s4 + $0x18] sm:$0xff] %v375_v27  ;;  %v873_v9 = vld [vmem:[#allocation2 + $0x40] sm:$0xf]  ;;  %1259 = vmatpush.msk.msrb.mxu1 %vm84_vm0, %v874_v28 }
 0x16e   :  { %1255 = vmatpush.msk.msrb.mxu0 %vm84_vm0, %v873_v9 }
 0x16f   :  { %380 = vst [vmem:[%s2006_s4 + $0x10] sm:$0xff] %v374_v29  ;;  %919 = vmatpush.msrb.mxu1 %v872_v38 }
 0x170   :  { %893 = vmatpush.msrb.mxu0 %v871_v39  ;;  %v369_v45 = vpop.f32.mrf.mxu1 }
 0x171   :  { %920 = vmatpush.msrb.mxu1 %v870_v30  ;;  %v370_v31 = vadd.f32 %v369_v45, %v1504_v2 }
 0x172   :  { %894 = vmatpush.msrb.mxu0 %v869_v41  ;;  %v343_v33 = vpop.f32.mrf.mxu0 }
 0x173   :  { %v344_v51 = vadd.f32 %v343_v33, %v1504_v2  ;;  %v377_v50 = vmax.f32 %v370_v31, 0.0  ;;  %921 = vmatpush.msrb.mxu1 %v868_v35  ;;  %v1093_v3 = vpop.permute.xlu2 %1092 }
 0x174   :  { %895 = vmatpush.msrb.mxu0 %v867_v40 }
 0x175   :  { %v376_v42 = vmax.f32 %v344_v51, 0.0  ;;  %383 = vst [vmem:[%s2006_s4 + $0x28] sm:$0x1] %v377_v50  ;;  %922 = vmatpush.msrb.mxu1 %v1789_v18 }
 0x176   :  { %896 = vmatpush.msrb.mxu0 %v1784_v16  ;;  %1260 = vmatmul.msk.f32.vlgmr.msrb.gmra.mxu1 %vm304_vm9, %v1632_v6 }
 0x177   :  { %382 = vst [vmem:[%s2006_s4 + $0x20] sm:$0x1] %v376_v42  ;;  %1256 = vmatmul.msk.f32.vlgmr.msrb.gmra.mxu0 %vm304_vm9, %v1632_v6 }
 0x179   :  { %v997_v43 = vpop.permute.xlu1 %996  ;;  %v995_v44 = vpop.permute.xlu0 %994 }
 0x17a   :  { %v1000_v46 = vsel %vm141_vm2, %v997_v43, %v999_v15  ;;  %v1001_v18 = vsel %vm141_vm2, %v995_v44, %v997_v43 }
 0x17b   :  { %v1003_v16 = vmul.f32 %v1000_v46, %v1520_v19  ;;  %v1002_v47 = vmul.f32 %v1001_v18, %v1523_v20  ;;  %v1114_v26 = vpop.permute.xlu2 %1113 }
 0x17d   :  { %1005 = vst [vmem:[#allocation2 + $0x10] sm:$0xf] %v1003_v16 }
 0x17e   :  { %1004 = vst [vmem:[#allocation2 + $0x18] sm:$0xf] %v1002_v47  ;;  %1261 = vmatmul.msk.f32.gmra.mxu1 %vm304_vm9, %v1658_v22 }
 0x17f   :  { %1257 = vmatmul.msk.f32.gmra.mxu0 %vm304_vm9, %v1658_v22 }
 0x181   :  { %v1018_v49 = vpop.permute.xlu1 %1017  ;;  %v1016_v52 = vpop.permute.xlu0 %1015 }
 0x182   :  { %v1021_v53 = vsel %vm163_vm3, %v1018_v49, %v1020_v36  ;;  %v1022_v54 = vsel %vm163_vm3, %v1016_v52, %v1018_v49 }
 0x183   :  { %v1024_v55 = vmul.f32 %v1021_v53, %v1402_v5  ;;  %v1023_v57 = vmul.f32 %v1022_v54, %v1400_v4 }
 0x185   :  { %v1028_v58 = vrot.slane %v1024_v55, 4  ;;  %v1027_v59 = vrot.slane %v1023_v57, 4  ;;  %v1139_v30 = vpop.permute.xlu2 %1138 }
 0x186   :  { %1262 = vmatmul.msk.f32.gmra.mxu1 %vm304_vm9, %v1688_v32 }
 0x187   :  { %1032 = vst [vmem:[#allocation2 + $0x10] sm:$0xf0] %v1028_v58  ;;  %1258 = vmatmul.msk.f32.gmra.mxu0 %vm304_vm9, %v1688_v32 }
 0x188   :  { %1031 = vst [vmem:[#allocation2 + $0x18] sm:$0xf0] %v1027_v59 }
 0x189   :  { %v1045_v61 = vpop.permute.xlu1 %1044  ;;  %v1043_v62 = vpop.permute.xlu0 %1042 }
 0x18a   :  { %v1048_v0 = vsel %vm191_vm4, %v1045_v61, %v1047_v48  ;;  %v1049_v1 = vsel %vm191_vm4, %v1043_v62, %v1045_v61 }
 0x18b   :  { %1051 = vst [vmem:[#allocation2 + $0x28] sm:$0xf] %v1048_v0 }
 0x18c   :  { %1050 = vst [vmem:[#allocation2 + $0x48] sm:$0xf] %v1049_v1 }
 0x18d   :  { %v974_v36 = vpop.permute.xlu2 %973 }
 0x18f   :  { %v1148_v62 = vld [vmem:[#allocation2 + $0x18] sm:$0xff] }
 0x191   :  { %v1064_v8 = vpop.permute.xlu1 %1063  ;;  %v1062_v7 = vpop.permute.xlu0 %1061 }
 0x192   :  { %v1067_v11 = vsel %vm211_vm5, %v1064_v8, %v1066_v60  ;;  %v1068_v25 = vsel %vm211_vm5, %v1062_v7, %v1064_v8  ;;  %v1149_v60 = vld [vmem:[#allocation2 + $0x10] sm:$0xff] }
 0x193   :  { %v1070_v37 = vmul.f32 %v1067_v11, %v1520_v19  ;;  %v1069_v12 = vmul.f32 %v1068_v25, %v1523_v20 }
 0x195   :  { %v1074_v24 = vrot.slane %v1070_v37, 4  ;;  %v1073_v13 = vrot.slane %v1069_v12, 4 }
 0x197   :  { %1078 = vst [vmem:[#allocation2 + $0x28] sm:$0xf0] %v1074_v24 }
 0x198   :  { %1077 = vst [vmem:[#allocation2 + $0x48] sm:$0xf0] %v1073_v13 }
 0x199   :  { %v1091_v21 = vpop.permute.xlu1 %1090  ;;  %v1089_v34 = vpop.permute.xlu0 %1088 }
 0x19a   :  { %v1094_v14 = vsel %vm239_vm6, %v1091_v21, %v1093_v3  ;;  %v1095_v15 = vsel %vm239_vm6, %v1089_v34, %v1091_v21 }
 0x19b   :  { %v1097_v17 = vmul.f32 %v1094_v14, %v1402_v5  ;;  %v1096_v23 = vmul.f32 %v1095_v15, %v1400_v4 }
 0x19d   :  { %1099 = vst [vmem:[#allocation2 + $0x20] sm:$0xf] %v1097_v17 }
 0x19e   :  { %1098 = vst [vmem:[#allocation2 + $0x8] sm:$0xf] %v1096_v23  ;;  %v1151_v55 = vld [vmem:[#allocation2 + $0x28] sm:$0xff] }
 0x19f   :  { %v1150_v59 = vld [vmem:[#allocation2 + $0x48] sm:$0xff] }
 0x1a1   :  { %v1112_v27 = vpop.permute.xlu1 %1111  ;;  %v1110_v28 = vpop.permute.xlu0 %1109 }
 0x1a2   :  { %v1115_v29 = vsel %vm261_vm7, %v1112_v27, %v1114_v26  ;;  %v1116_v9 = vsel %vm261_vm7, %v1110_v28, %v1112_v27 }
 0x1a3   :  { %v1120_v38 = vrot.slane %v1115_v29, 4  ;;  %v1119_v39 = vrot.slane %v1116_v9, 4 }
 0x1a5   :  { %1124 = vst [vmem:[#allocation2 + $0x20] sm:$0xf0] %v1120_v38 }
 0x1a6   :  { %1123 = vst [vmem:[#allocation2 + $0x8] sm:$0xf0] %v1119_v39 }
 0x1a9   :  { %v1137_v45 = vpop.permute.xlu1 %1136  ;;  %v1135_v5 = vpop.permute.xlu0 %1134 }
 0x1aa   :  { %v1140_v4 = vsel %vm287_vm8, %v1137_v45, %v1139_v30  ;;  %v1141_v41 = vsel %vm287_vm8, %v1135_v5, %v1137_v45 }
 0x1ab   :  { %v1143_v31 = vmul.f32 %v1140_v4, %v1520_v19  ;;  %v1142_v33 = vmul.f32 %v1141_v41, %v1523_v20 }
 0x1ac   :  { %v1153_v49 = vld [vmem:[#allocation2 + $0x20] sm:$0xff] }
 0x1ad   :  { %1145 = vst [vmem:[#allocation2 + $0x38] sm:$0xf] %v1143_v31  ;;  %v1152_v56 = vld [vmem:[#allocation2 + $0x8] sm:$0xff] }
 0x1ae   :  { %1144 = vst [vmem:[#allocation2 + $0x40] sm:$0xf] %v1142_v33  ;;  %v643_v35 = vpop.f32.mrf.mxu3 }
 0x1af   :  { %v644_v51 = vadd.f32 %v643_v35, %v1499_v63 }
 0x1b0   :  { %v617_v50 = vpop.f32.mrf.mxu2 }
 0x1b1   :  { %v972_v40 = vpop.permute.xlu1 %971  ;;  %v970_v42 = vpop.permute.xlu0 %969  ;;  %v618_v43 = vadd.f32 %v617_v50, %v1499_v63  ;;  %v653_v44 = vmax.f32 %v644_v51, 0.0 }
 0x1b2   :  { %v975_v46 = vsel %vm115_vm1, %v972_v40, %v974_v36  ;;  %v976_v19 = vsel %vm115_vm1, %v970_v42, %v972_v40 }
 0x1b3   :  { %v980_v18 = vrot.slane %v975_v46, 4  ;;  %v979_v20 = vrot.slane %v976_v19, 4  ;;  %v652_v16 = vmax.f32 %v618_v43, 0.0  ;;  %1250 = vst [vmem:[%s2006_s4 + $0x38] sm:$0xff] %v653_v44 }
 0x1b4   :  { %v1155_v47 = vld [vmem:[#allocation2 + $0x38] sm:$0xf] }
 0x1b5   :  { %984 = vst [vmem:[#allocation2] sm:$0xf0] %v980_v18  ;;  %v1154_v48 = vld [vmem:[#allocation2 + $0x40] sm:$0xf]  ;;  %1273 = vmatpush.msk.msrb.mxu3 %vm84_vm0, %v1155_v47 }
 0x1b6   :  { %983 = vst [vmem:[#allocation2 + $0x30] sm:$0xf0] %v979_v20  ;;  %1269 = vmatpush.msk.msrb.mxu2 %vm84_vm0, %v1154_v48  ;;  %v646_v52 = vpop.f32.mrf.mxu3 }
 0x1b7   :  { %1249 = vst [vmem:[%s2006_s4 + $0x30] sm:$0xff] %v652_v16  ;;  %1200 = vmatpush.msrb.mxu3 %v1153_v49  ;;  %v647_v53 = vadd.f32 %v646_v52, %v1511_v10 }
 0x1b8   :  { %1174 = vmatpush.msrb.mxu2 %v1152_v56  ;;  %v620_v54 = vpop.f32.mrf.mxu2 }
 0x1b9   :  { %v621_v57 = vadd.f32 %v620_v54, %v1511_v10  ;;  %v655_v58 = vmax.f32 %v647_v53, 0.0  ;;  %1201 = vmatpush.msrb.mxu3 %v1151_v55 }
 0x1ba   :  { %1175 = vmatpush.msrb.mxu2 %v1150_v59 }
 0x1bb   :  { %v654_v61 = vmax.f32 %v621_v57, 0.0  ;;  %1252 = vst [vmem:[%s2006_s4 + $0x48] sm:$0xff] %v655_v58  ;;  %1202 = vmatpush.msrb.mxu3 %v1149_v60 }
 0x1bc   :  { %1176 = vmatpush.msrb.mxu2 %v1148_v62  ;;  %v1147_v0 = vld [vmem:[#allocation2] sm:$0xff] }
 0x1bd   :  { %1251 = vst [vmem:[%s2006_s4 + $0x40] sm:$0xff] %v654_v61  ;;  %v1146_v1 = vld [vmem:[#allocation2 + $0x30] sm:$0xff]  ;;  %1203 = vmatpush.msrb.mxu3 %v1147_v0 }
 0x1be   :  { %1177 = vmatpush.msrb.mxu2 %v1146_v1  ;;  %1274 = vmatmul.msk.f32.vlgmr.msrb.gmra.mxu3 %vm304_vm9, %v1632_v6  ;;  %v649_v3 = vpop.f32.mrf.mxu3 }
 0x1bf   :  { %1270 = vmatmul.msk.f32.vlgmr.msrb.gmra.mxu2 %vm304_vm9, %v1632_v6  ;;  %v650_v8 = vadd.f32 %v649_v3, %v1504_v2 }
 0x1c0   :  { %v623_v7 = vpop.f32.mrf.mxu2 }
 0x1c1   :  { %v624_v11 = vadd.f32 %v623_v7, %v1504_v2  ;;  %v657_v25 = vmax.f32 %v650_v8, 0.0 }
 0x1c3   :  { %v656_v37 = vmax.f32 %v624_v11, 0.0  ;;  %1254 = vst [vmem:[%s2006_s4 + $0x58] sm:$0x1] %v657_v25 }
 0x1c5   :  { %1253 = vst [vmem:[%s2006_s4 + $0x50] sm:$0x1] %v656_v37 }
 0x1c6   :  { %1275 = vmatmul.msk.f32.gmra.mxu3 %vm304_vm9, %v1658_v22 }
 0x1c7   :  { %1271 = vmatmul.msk.f32.gmra.mxu2 %vm304_vm9, %v1658_v22 }
 0x1ce   :  { %1276 = vmatmul.msk.f32.gmra.mxu3 %vm304_vm9, %v1688_v32 }
 0x1cf   :  { %1272 = vmatmul.msk.f32.gmra.mxu2 %vm304_vm9, %v1688_v32 }
 0x1f3   :  { %v924_v6 = vpop.f32.mrf.mxu1 }
 0x1f4   :  { %v898_v12 = vpop.f32.mrf.mxu0  ;;  %v925_v24 = vadd.f32 %v924_v6, %v1499_v63 }
 0x1f5   :  { %v899_v13 = vadd.f32 %v898_v12, %v1499_v63 }
 0x1f6   :  { %v934_v21 = vmax.f32 %v925_v24, 0.0 }
 0x1f7   :  { %v933_v34 = vmax.f32 %v899_v13, 0.0 }
 0x1f8   :  { %1264 = vst [vmem:[%s2006_s4 + $0x68] sm:$0xff] %v934_v21 }
 0x1f9   :  { %1263 = vst [vmem:[%s2006_s4 + $0x60] sm:$0xff] %v933_v34 }
 0x1fb   :  { %v927_v22 = vpop.f32.mrf.mxu1 }
 0x1fc   :  { %v901_v14 = vpop.f32.mrf.mxu0  ;;  %v928_v32 = vadd.f32 %v927_v22, %v1511_v10 }
 0x1fd   :  { %v902_v15 = vadd.f32 %v901_v14, %v1511_v10 }
 0x1fe   :  { %v936_v17 = vmax.f32 %v928_v32, 0.0 }
 0x1ff   :  { %v935_v23 = vmax.f32 %v902_v15, 0.0 }
 0x200   :  { %1266 = vst [vmem:[%s2006_s4 + $0x78] sm:$0xff] %v936_v17 }
 0x201   :  { %1265 = vst [vmem:[%s2006_s4 + $0x70] sm:$0xff] %v935_v23 }
 0x203   :  { %v930_v26 = vpop.f32.mrf.mxu1 }
 0x204   :  { %v904_v27 = vpop.f32.mrf.mxu0  ;;  %v931_v28 = vadd.f32 %v930_v26, %v1504_v2 }
 0x205   :  { %v905_v29 = vadd.f32 %v904_v27, %v1504_v2 }
 0x206   :  { %v938_v9 = vmax.f32 %v931_v28, 0.0 }
 0x207   :  { %v937_v38 = vmax.f32 %v905_v29, 0.0 }
 0x208   :  { %1268 = vst [vmem:[%s2006_s4 + $0x88] sm:$0x1] %v938_v9 }
 0x209   :  { %1267 = vst [vmem:[%s2006_s4 + $0x80] sm:$0x1] %v937_v38 }
 0x241   :  { %v1205_v39 = vpop.f32.mrf.mxu3 }
 0x242   :  { %v1179_v30 = vpop.f32.mrf.mxu2  ;;  %v1206_v45 = vadd.f32 %v1205_v39, %v1499_v63 }
 0x243   :  { %v1180_v5 = vadd.f32 %v1179_v30, %v1499_v63 }
 0x244   :  { %v1215_v4 = vmax.f32 %v1206_v45, 0.0 }
 0x245   :  { %v1214_v41 = vmax.f32 %v1180_v5, 0.0 }
 0x246   :  { %1278 = vst [vmem:[%s2006_s4 + $0x98] sm:$0xff] %v1215_v4 }
 0x247   :  { %1277 = vst [vmem:[%s2006_s4 + $0x90] sm:$0xff] %v1214_v41 }
 0x249   :  { %v1208_v31 = vpop.f32.mrf.mxu3 }
 0x24a   :  { %v1182_v33 = vpop.f32.mrf.mxu2  ;;  %v1209_v35 = vadd.f32 %v1208_v31, %v1511_v10 }
 0x24b   :  { %v1183_v36 = vadd.f32 %v1182_v33, %v1511_v10 }
 0x24c   :  { %v1217_v51 = vmax.f32 %v1209_v35, 0.0 }
 0x24d   :  { %v1216_v50 = vmax.f32 %v1183_v36, 0.0 }
 0x24e   :  { %1280 = vst [vmem:[%s2006_s4 + $0xa8] sm:$0xff] %v1217_v51 }
 0x24f   :  { %1279 = vst [vmem:[%s2006_s4 + $0xa0] sm:$0xff] %v1216_v50 }
 0x251   :  { %v1211_v63 = vpop.f32.mrf.mxu3 }
 0x252   :  { %v1185_v40 = vpop.f32.mrf.mxu2  ;;  %v1212_v42 = vadd.f32 %v1211_v63, %v1504_v2 }
 0x253   :  { %v1186_v43 = vadd.f32 %v1185_v40, %v1504_v2 }
 0x254   :  { %v1219_v44 = vmax.f32 %v1212_v42, 0.0 }
 0x255   :  { %v1218_v46 = vmax.f32 %v1186_v43, 0.0 }
 0x256   :  { %1282 = vst [vmem:[%s2006_s4 + $0xb8] sm:$0x1] %v1219_v44 }
 0x257   :  { %1281 = vst [vmem:[%s2006_s4 + $0xb0] sm:$0x1] %v1218_v46 }
 0x258   :  { %1231 = vsyncpa [#allocation4], 1 }
 0x259   :  { %1232 = vsyncpa [#allocation6], 1 }

</bundles_post_ra>
